<compile_context>
chip_gen: v7x
topology: tpu7x:2x2x1
jax: 0.10.0
libtpu: 0.0.40
codegen_flags: <defaults>
</compile_context>

<pallas_src>
import functools

import numpy as np
import jax
import jax.numpy as jnp
from jax.experimental import pallas as pl
from jax.experimental.pallas import tpu as pltpu

_LN_EPS = 1e-5
_BN_EPS = 1e-5
_SQRT_2_OVER_PI = 0.7978845608028654


def _gelu_tanh(x):
  # tanh-approximate GELU: polynomial stays on VALU, tanh rides the EUP slot.
  return 0.5 * x * (1.0 + jnp.tanh(_SQRT_2_OVER_PI * (x + 0.044715 * x * x * x)))


# ----------------------------------------------------------------------------
# Pallas kernel: one MVTEncoder forward for a block of `Bb` batch elements
# ----------------------------------------------------------------------------
def mvt_kernel(num_heads,
               x_ref,
               gpre_ref, bpre_ref,
               wqkv_ref, bqkv_ref,
               wo_ref, bo_ref,
               g1_ref, b1_ref,
               w1_ref, b1f_ref,
               w2_ref, b2f_ref,
               g2_ref, b2_ref,
               out_ref):
  f32, bf16 = jnp.float32, jnp.bfloat16
  Bb, S, D = x_ref.shape
  H = num_heads
  hd = D // H
  R = Bb * S                                        # rows processed per step

  x = x_ref[...].astype(f32).reshape(R, D)          # (R, D)

  def layer_norm(v, g_ref, b_ref):
    mu = jnp.mean(v, axis=-1, keepdims=True)
    var = jnp.mean(jnp.square(v - mu), axis=-1, keepdims=True)
    return (v - mu) * jax.lax.rsqrt(var + _LN_EPS) * g_ref[...] + b_ref[...]

  # ---- pre_norm -------------------------------------------------------------
  xn = layer_norm(x, gpre_ref, bpre_ref)
  xn_b = xn.astype(bf16)

  # ---- fused QKV projection: one lane-dense (R, D) x (D, 3D) MXU matmul -----
  # (1/sqrt(hd) attention scale already folded into the Q third + its bias)
  qkv = jnp.dot(xn_b, wqkv_ref[...], preferred_element_type=f32) + bqkv_ref[...]

  # ---- multi-head attention --------------------------------------------------
  # Heads are separated with static lane slices (no per-head weight matmuls);
  # the SxS score / attn@V matmuls stay f32 (tiny shapes).  Head outputs are
  # lane-concatenated into one (R, D) slab so the bn1-folded output projection
  # is a single K=D MXU matmul instead of H K=hd matmuls + VALU accumulates.
  head_out = []
  for h in range(H):                                # static, slicing only
    qh = qkv[:, h * hd:(h + 1) * hd].reshape(Bb, S, hd)
    kh = qkv[:, D + h * hd:D + (h + 1) * hd].reshape(Bb, S, hd)
    vh = qkv[:, 2 * D + h * hd:2 * D + (h + 1) * hd].reshape(Bb, S, hd)

    s = jnp.einsum('bqd,bkd->bqk', qh, kh, preferred_element_type=f32)
    s = s - jnp.max(s, axis=-1, keepdims=True)
    e = jnp.exp(s)
    p = e * pl.reciprocal(jnp.sum(e, axis=-1, keepdims=True), approx=True)
    oh = jnp.einsum('bqk,bkd->bqd', p, vh, preferred_element_type=f32)
    head_out.append(oh.reshape(R, hd))

  att_cat = jnp.concatenate(head_out, axis=-1)      # (R, D), lane-ordered heads
  att = jnp.dot(att_cat.astype(bf16), wo_ref[...],
                preferred_element_type=f32) + bo_ref[...]   # bn1 folded

  # ---- norm1 + residual (Dropout = identity, eval mode) ---------------------
  x1 = layer_norm(xn + att, g1_ref, b1_ref)

  # ---- FFN: Linear(+bn2) -> tanh-GELU -> Linear(+bn3) -----------------------
  h1 = jnp.dot(x1.astype(bf16), w1_ref[...], preferred_element_type=f32) + b1f_ref[...]
  h1 = _gelu_tanh(h1)
  h2 = jnp.dot(h1.astype(bf16), w2_ref[...], preferred_element_type=f32) + b2f_ref[...]

  # ---- norm2 + residual ------------------------------------------------------
  out = layer_norm(x1 + h2, g2_ref, b2_ref)
  out_ref[...] = out.reshape(Bb, S, D).astype(out_ref.dtype)


# ----------------------------------------------------------------------------
# One-time parameter preparation (all folds / transposes / casts on the host)
# ----------------------------------------------------------------------------
def prepare_params(p, dim, num_heads):
  assert dim % num_heads == 0
  hd = dim // num_heads
  scale = hd ** -0.5
  f32, bf16 = jnp.float32, jnp.bfloat16

  w_in, b_in = p["w_in"], p["b_in"]                 # (3D, D), (3D,)
  wq, wk, wv = w_in[:dim], w_in[dim:2 * dim], w_in[2 * dim:]
  bq, bk, bv = b_in[:dim], b_in[dim:2 * dim], b_in[2 * dim:]

  # Fused, pre-transposed QKV weight (D, 3D); attention scale folded into Q.
  wqkv = jnp.concatenate([wq.T * scale, wk.T, wv.T], axis=1).astype(bf16)
  bqkv = jnp.concatenate([bq * scale, bk, bv]).reshape(1, 3 * dim).astype(f32)

  # Output projection with bn1 folded (per-output-channel scale/shift).
  s1, t1 = p["bn1_scale"], p["bn1_shift"]
  wo = (p["w_out"].T * s1[None, :]).astype(bf16)    # (D, D)
  bo = (p["b_out"] * s1 + t1).reshape(1, dim).astype(f32)

  # FFN weights with bn2 / bn3 folded.
  s2, t2 = p["bn2_scale"], p["bn2_shift"]
  w1 = (p["w1"].T * s2[None, :]).astype(bf16)       # (D, 2D)
  b1f = (p["b1"] * s2 + t2).reshape(1, -1).astype(f32)

  s3, t3 = p["bn3_scale"], p["bn3_shift"]
  w2 = (p["w2"].T * s3[None, :]).astype(bf16)       # (2D, D)
  b2f = (p["b2"] * s3 + t3).reshape(1, -1).astype(f32)

  def row(v):
    return v.reshape(1, -1).astype(f32)

  return dict(
      gpre=row(p["ln_pre_g"]), bpre=row(p["ln_pre_b"]),
      wqkv=wqkv, bqkv=bqkv, wo=wo, bo=bo,
      g1=row(p["ln1_g"]), b1=row(p["ln1_b"]),
      w1=w1, b1f=b1f, w2=w2, b2f=b2f,
      g2=row(p["ln2_g"]), b2=row(p["ln2_b"]))


# ----------------------------------------------------------------------------
# Wrapper: layout, batch blocking, VMEM budget, pallas_call
# ----------------------------------------------------------------------------
def mvt_encoder_pallas(x_sbd, prm, num_heads, block_b=None):
  S, B, D = x_sbd.shape
  x_bsd = jnp.transpose(x_sbd, (1, 0, 2))           # (B, S, D)

  if block_b is None:
    # ~512 rows (Bb*S) per grid step amortizes per-step overhead and MXU fill,
    # but keep >= 2 grid steps so v7x's two TensorCores both get work
    # (the batch grid axis is marked "parallel").
    block_b = max(1, min(B, 512 // max(S, 1)))
    if B > 1:
      block_b = min(block_b, (B + 1) // 2)
  Bb = block_b
  Bp = ((B + Bb - 1) // Bb) * Bb
  if Bp != B:                                       # zero-pad to a full block
    x_bsd = jnp.pad(x_bsd, ((0, Bp - B), (0, 0), (0, 0)))

  args = [x_bsd,
          prm["gpre"], prm["bpre"],
          prm["wqkv"], prm["bqkv"],
          prm["wo"], prm["bo"],
          prm["g1"], prm["b1"],
          prm["w1"], prm["b1f"], prm["w2"], prm["b2f"],
          prm["g2"], prm["b2"]]

  # Explicit VMEM budget: resident bf16 weights (worst-case double-buffered)
  # + double-buffered activation blocks + f32 in-kernel temporaries.
  weight_bytes = 2 * (16 * D * D)
  act_bytes = Bb * S * D * 4 * (4 + 16)
  vmem_limit = int(min(max(weight_bytes + act_bytes + (8 << 20), 32 << 20),
                       100 << 20))

  out_shape = jax.ShapeDtypeStruct((Bp, S, D), x_sbd.dtype)
  out_spec = pl.BlockSpec((Bb, S, D), lambda i: (i, 0, 0))
  cparams = pltpu.CompilerParams(dimension_semantics=("parallel",),
                                 vmem_limit_bytes=vmem_limit)

  def call(single_buffer_weights):
    def const_spec(a):                              # grid-invariant weight operand
      idx = lambda i, n=a.ndim: (0,) * n
      if single_buffer_weights:
        return pl.BlockSpec(a.shape, idx, pipeline_mode=pl.Buffered(1))
      return pl.BlockSpec(a.shape, idx)

    in_specs = [pl.BlockSpec((Bb, S, D), lambda i: (i, 0, 0))]
    in_specs += [const_spec(a) for a in args[1:]]
    return pl.pallas_call(
        functools.partial(mvt_kernel, num_heads),
        out_shape=out_shape,
        grid=(Bp // Bb,),
        in_specs=in_specs,
        out_specs=out_spec,
        compiler_params=cparams,
    )(*args)

  try:
    out = call(True)                                # single-buffered weights
  except Exception:                                 # pl.Buffered(1) unsupported
    out = call(False)

  return jnp.transpose(out[:B], (1, 0, 2))          # back to (S, B, D)


# ----------------------------------------------------------------------------
# Deterministic parameter init (mirrors the shapes in MVTEncoder.__init__)
# ----------------------------------------------------------------------------
def init_params(key, dim):
  ks = jax.random.split(key, 26)

  def rn(k, shape, s=0.1):
    return s * jax.random.normal(k, shape, jnp.float32)

  def bn_fold(kw, kb, km, kv, n):
    w = 1.0 + rn(kw, (n,))
    b = rn(kb, (n,))
    m = rn(km, (n,))
    v = jax.random.uniform(kv, (n,), jnp.float32, 0.5, 1.5)
    scale = w / jnp.sqrt(v + _BN_EPS)
    return scale, b - m * scale

  p = {}
  p["ln_pre_g"] = 1.0 + rn(ks[0], (dim,)); p["ln_pre_b"] = rn(ks[1], (dim,))
  p["w_in"] = rn(ks[2], (3 * dim, dim));   p["b_in"] = rn(ks[3], (3 * dim,))
  p["w_out"] = rn(ks[4], (dim, dim));      p["b_out"] = rn(ks[5], (dim,))
  p["bn1_scale"], p["bn1_shift"] = bn_fold(ks[6], ks[7], ks[8], ks[9], dim)
  p["ln1_g"] = 1.0 + rn(ks[10], (dim,));   p["ln1_b"] = rn(ks[11], (dim,))
  p["w1"] = rn(ks[12], (2 * dim, dim));    p["b1"] = rn(ks[13], (2 * dim,))
  p["bn2_scale"], p["bn2_shift"] = bn_fold(ks[14], ks[15], ks[16], ks[17], 2 * dim)
  p["w2"] = rn(ks[18], (dim, 2 * dim));    p["b2"] = rn(ks[19], (dim,))
  p["bn3_scale"], p["bn3_shift"] = bn_fold(ks[20], ks[21], ks[22], ks[23], dim)
  p["ln2_g"] = 1.0 + rn(ks[24], (dim,));   p["ln2_b"] = rn(ks[25], (dim,))
  return p


# ----------------------------------------------------------------------------
# Pure-JAX reference (mirrors the PyTorch forward, eval mode) for validation
# ----------------------------------------------------------------------------
def mvt_reference(x, p, num_heads):
  S, B, D = x.shape
  hd = D // num_heads

  def ln(v, g, b):
    mu = v.mean(-1, keepdims=True)
    var = ((v - mu) ** 2).mean(-1, keepdims=True)
    return (v - mu) / jnp.sqrt(var + _LN_EPS) * g + b

  xn = ln(x, p["ln_pre_g"], p["ln_pre_b"])
  qkv = xn @ p["w_in"].T + p["b_in"]
  q, k, v = jnp.split(qkv, 3, axis=-1)

  def heads(t):
    return t.reshape(S, B, num_heads, hd).transpose(1, 2, 0, 3)  # (B,H,S,hd)

  qh, kh, vh = heads(q) * (hd ** -0.5), heads(k), heads(v)
  scores = qh @ kh.transpose(0, 1, 3, 2)
  attn = jax.nn.softmax(scores, axis=-1)
  o = (attn @ vh).transpose(2, 0, 1, 3).reshape(S, B, D)
  att = o @ p["w_out"].T + p["b_out"]
  att = att * p["bn1_scale"] + p["bn1_shift"]
  x1 = ln(xn + att, p["ln1_g"], p["ln1_b"])
  h1 = x1 @ p["w1"].T + p["b1"]
  h1 = h1 * p["bn2_scale"] + p["bn2_shift"]
  h1 = jax.nn.gelu(h1, approximate=False)
  h2 = h1 @ p["w2"].T + p["b2"]
  h2 = h2 * p["bn3_scale"] + p["bn3_shift"]
  return ln(x1 + h2, p["ln2_g"], p["ln2_b"])


if __name__ == "__main__":
  S, B, D, H = 8, 2, 32, 4
  key = jax.random.PRNGKey(0)
  kx, kp = jax.random.split(key)
  x = jax.random.normal(kx, (S, B, D), jnp.float32)   # (seq, batch, dim)
  params = init_params(kp, D)
  prm = prepare_params(params, D, H)                  # one-time host-side prep

  out = mvt_encoder_pallas(x, prm, H)
  out = jax.block_until_ready(out)

  # Reference in full f32 (precision scoped to the reference only, not global).
  with jax.default_matmul_precision("highest"):
    ref = mvt_reference(x, params, H)

  # bf16 MXU matmuls + tanh-approx GELU + EUP reciprocal softmax denominator
  # -> bf16-level tolerance vs the exact-erf f32 reference.
  np.testing.assert_allclose(np.asarray(out), np.asarray(ref),
                             atol=3e-2, rtol=3e-2)
  assert out.shape == (S, B, D) and out.dtype == jnp.float32
  print("KERNEL_OK")
</pallas_src>

<mosaic_0001>
module attributes {stable_mosaic.version = 11 : i64} {
  func.func @mvt_kernel(%arg0: i32, %arg1: memref<1x8x32xf32, #tpu.memory_space<vmem>>, %arg2: memref<1x32xf32, #tpu.memory_space<vmem>>, %arg3: memref<1x32xf32, #tpu.memory_space<vmem>>, %arg4: memref<32x96xbf16, #tpu.memory_space<vmem>>, %arg5: memref<1x96xf32, #tpu.memory_space<vmem>>, %arg6: memref<32x32xbf16, #tpu.memory_space<vmem>>, %arg7: memref<1x32xf32, #tpu.memory_space<vmem>>, %arg8: memref<1x32xf32, #tpu.memory_space<vmem>>, %arg9: memref<1x32xf32, #tpu.memory_space<vmem>>, %arg10: memref<32x64xbf16, #tpu.memory_space<vmem>>, %arg11: memref<1x64xf32, #tpu.memory_space<vmem>>, %arg12: memref<64x32xbf16, #tpu.memory_space<vmem>>, %arg13: memref<1x32xf32, #tpu.memory_space<vmem>>, %arg14: memref<1x32xf32, #tpu.memory_space<vmem>>, %arg15: memref<1x32xf32, #tpu.memory_space<vmem>>, %arg16: memref<1x8x32xf32, #tpu.memory_space<vmem>>) attributes {dimension_semantics = [#tpu.dimension_semantics<parallel>], iteration_bounds = array<i64: 2>, scalar_prefetch = 0 : i64, scratch_operands = 0 : i64, tpu.core_type = #tpu.core_type<tc>, window_params = [{transform_indices = @transform_0, window_bounds = array<i64: 1, 8, 32>}, {pipeline_mode = #tpu.pipeline_mode<synchronous>, transform_indices = @transform_1, window_bounds = array<i64: 1, 32>}, {pipeline_mode = #tpu.pipeline_mode<synchronous>, transform_indices = @transform_2, window_bounds = array<i64: 1, 32>}, {pipeline_mode = #tpu.pipeline_mode<synchronous>, transform_indices = @transform_3, window_bounds = array<i64: 32, 96>}, {pipeline_mode = #tpu.pipeline_mode<synchronous>, transform_indices = @transform_4, window_bounds = array<i64: 1, 96>}, {pipeline_mode = #tpu.pipeline_mode<synchronous>, transform_indices = @transform_5, window_bounds = array<i64: 32, 32>}, {pipeline_mode = #tpu.pipeline_mode<synchronous>, transform_indices = @transform_6, window_bounds = array<i64: 1, 32>}, {pipeline_mode = #tpu.pipeline_mode<synchronous>, transform_indices = @transform_7, window_bounds = array<i64: 1, 32>}, {pipeline_mode = #tpu.pipeline_mode<synchronous>, transform_indices = @transform_8, window_bounds = array<i64: 1, 32>}, {pipeline_mode = #tpu.pipeline_mode<synchronous>, transform_indices = @transform_9, window_bounds = array<i64: 32, 64>}, {pipeline_mode = #tpu.pipeline_mode<synchronous>, transform_indices = @transform_10, window_bounds = array<i64: 1, 64>}, {pipeline_mode = #tpu.pipeline_mode<synchronous>, transform_indices = @transform_11, window_bounds = array<i64: 64, 32>}, {pipeline_mode = #tpu.pipeline_mode<synchronous>, transform_indices = @transform_12, window_bounds = array<i64: 1, 32>}, {pipeline_mode = #tpu.pipeline_mode<synchronous>, transform_indices = @transform_13, window_bounds = array<i64: 1, 32>}, {pipeline_mode = #tpu.pipeline_mode<synchronous>, transform_indices = @transform_14, window_bounds = array<i64: 1, 32>}, {transform_indices = @transform_15, window_bounds = array<i64: 1, 8, 32>}]} {
    %c0 = arith.constant 0 : index
    %c0_0 = arith.constant 0 : index
    %c0_1 = arith.constant 0 : index
    %0 = vector.load %arg1[%c0, %c0_0, %c0_1] : memref<1x8x32xf32, #tpu.memory_space<vmem>>, vector<1x8x32xf32>
    %1 = vector.shape_cast %0 : vector<1x8x32xf32> to vector<8x32xf32>
    %cst = arith.constant dense<0.000000e+00> : vector<8xf32>
    %2 = vector.multi_reduction <add>, %1, %cst [1] : vector<8x32xf32> to vector<8xf32>
    %3 = vector.shape_cast %2 : vector<8xf32> to vector<8x1xf32>
    %cst_2 = arith.constant 3.200000e+01 : f32
    %4 = vector.broadcast %cst_2 : f32 to vector<8x1xf32>
    %5 = arith.divf %3, %4 : vector<8x1xf32>
    %6 = vector.broadcast %5 : vector<8x1xf32> to vector<8x32xf32>
    %7 = arith.subf %1, %6 : vector<8x32xf32>
    %8 = arith.mulf %7, %7 : vector<8x32xf32>
    %cst_3 = arith.constant dense<0.000000e+00> : vector<8xf32>
    %9 = vector.multi_reduction <add>, %8, %cst_3 [1] : vector<8x32xf32> to vector<8xf32>
    %10 = vector.shape_cast %9 : vector<8xf32> to vector<8x1xf32>
    %cst_4 = arith.constant 3.200000e+01 : f32
    %11 = vector.broadcast %cst_4 : f32 to vector<8x1xf32>
    %12 = arith.divf %10, %11 : vector<8x1xf32>
    %13 = vector.broadcast %5 : vector<8x1xf32> to vector<8x32xf32>
    %14 = arith.subf %1, %13 : vector<8x32xf32>
    %cst_5 = arith.constant 9.99999974E-6 : f32
    %15 = vector.broadcast %cst_5 : f32 to vector<8x1xf32>
    %16 = arith.addf %12, %15 : vector<8x1xf32>
    %17 = math.rsqrt %16 : vector<8x1xf32>
    %18 = vector.broadcast %17 : vector<8x1xf32> to vector<8x32xf32>
    %19 = arith.mulf %14, %18 : vector<8x32xf32>
    %c0_6 = arith.constant 0 : index
    %c0_7 = arith.constant 0 : index
    %20 = vector.load %arg2[%c0_6, %c0_7] : memref<1x32xf32, #tpu.memory_space<vmem>>, vector<1x32xf32>
    %21 = vector.broadcast %20 : vector<1x32xf32> to vector<8x32xf32>
    %22 = arith.mulf %19, %21 : vector<8x32xf32>
    %c0_8 = arith.constant 0 : index
    %c0_9 = arith.constant 0 : index
    %23 = vector.load %arg3[%c0_8, %c0_9] : memref<1x32xf32, #tpu.memory_space<vmem>>, vector<1x32xf32>
    %24 = vector.broadcast %23 : vector<1x32xf32> to vector<8x32xf32>
    %25 = arith.addf %22, %24 : vector<8x32xf32>
    %26 = arith.truncf %25 : vector<8x32xf32> to vector<8x32xbf16>
    %c0_10 = arith.constant 0 : index
    %c0_11 = arith.constant 0 : index
    %27 = vector.load %arg4[%c0_10, %c0_11] : memref<32x96xbf16, #tpu.memory_space<vmem>>, vector<32x96xbf16>
    %cst_12 = arith.constant dense<0.000000e+00> : vector<8x96xf32>
    %28 = tpu.matmul %26, %27, %cst_12 {dimension_numbers = #tpu.dot_dimension_numbers<[1], [0], [0], [1], [0, 0, 1, 1], [], []>} : vector<8x32xbf16>, vector<32x96xbf16>, vector<8x96xf32> -> vector<8x96xf32>
    %c0_13 = arith.constant 0 : index
    %c0_14 = arith.constant 0 : index
    %29 = vector.load %arg5[%c0_13, %c0_14] : memref<1x96xf32, #tpu.memory_space<vmem>>, vector<1x96xf32>
    %30 = vector.broadcast %29 : vector<1x96xf32> to vector<8x96xf32>
    %31 = arith.addf %28, %30 : vector<8x96xf32>
    %32 = vector.extract_strided_slice %31 {offsets = [0, 0], sizes = [8, 8], strides = [1, 1]} : vector<8x96xf32> to vector<8x8xf32>
    %33 = vector.shape_cast %32 : vector<8x8xf32> to vector<1x8x8xf32>
    %34 = vector.extract_strided_slice %31 {offsets = [0, 32], sizes = [8, 8], strides = [1, 1]} : vector<8x96xf32> to vector<8x8xf32>
    %35 = vector.shape_cast %34 : vector<8x8xf32> to vector<1x8x8xf32>
    %36 = vector.extract_strided_slice %31 {offsets = [0, 64], sizes = [8, 8], strides = [1, 1]} : vector<8x96xf32> to vector<8x8xf32>
    %37 = vector.shape_cast %36 : vector<8x8xf32> to vector<1x8x8xf32>
    "tpu.trace_start"() <{level = 10 : i32, message = "bqd,bkd->bqk"}> : () -> ()
    %cst_15 = arith.constant dense<0.000000e+00> : vector<1x8x8xf32>
    %38 = tpu.matmul %33, %35, %cst_15 {dimension_numbers = #tpu.dot_dimension_numbers<[2], [2], [1], [1], [0, 0, 0, 1, 1, 1], [0], [0]>} : vector<1x8x8xf32>, vector<1x8x8xf32>, vector<1x8x8xf32> -> vector<1x8x8xf32>
    "tpu.trace_stop"() : () -> ()
    %cst_16 = arith.constant dense<0xFF800000> : vector<1x8xf32>
    %39 = vector.multi_reduction <maximumf>, %38, %cst_16 [2] : vector<1x8x8xf32> to vector<1x8xf32>
    %40 = vector.shape_cast %39 : vector<1x8xf32> to vector<1x8x1xf32>
    %41 = vector.broadcast %40 : vector<1x8x1xf32> to vector<1x8x8xf32>
    %42 = arith.subf %38, %41 : vector<1x8x8xf32>
    %43 = math.exp %42 : vector<1x8x8xf32>
    %cst_17 = arith.constant dense<0.000000e+00> : vector<1x8xf32>
    %44 = vector.multi_reduction <add>, %43, %cst_17 [2] : vector<1x8x8xf32> to vector<1x8xf32>
    %45 = vector.shape_cast %44 : vector<1x8xf32> to vector<1x8x1xf32>
    %46 = tpu.reciprocal %45 {approx = true} : vector<1x8x1xf32> -> vector<1x8x1xf32>
    %47 = vector.broadcast %46 : vector<1x8x1xf32> to vector<1x8x8xf32>
    %48 = arith.mulf %43, %47 : vector<1x8x8xf32>
    "tpu.trace_start"() <{level = 10 : i32, message = "bqk,bkd->bqd"}> : () -> ()
    %cst_18 = arith.constant dense<0.000000e+00> : vector<1x8x8xf32>
    %49 = tpu.matmul %48, %37, %cst_18 {dimension_numbers = #tpu.dot_dimension_numbers<[2], [1], [1], [2], [0, 0, 0, 1, 1, 2], [0], [0]>} : vector<1x8x8xf32>, vector<1x8x8xf32>, vector<1x8x8xf32> -> vector<1x8x8xf32>
    "tpu.trace_stop"() : () -> ()
    %50 = vector.shape_cast %49 : vector<1x8x8xf32> to vector<8x8xf32>
    %51 = vector.extract_strided_slice %31 {offsets = [0, 8], sizes = [8, 8], strides = [1, 1]} : vector<8x96xf32> to vector<8x8xf32>
    %52 = vector.shape_cast %51 : vector<8x8xf32> to vector<1x8x8xf32>
    %53 = vector.extract_strided_slice %31 {offsets = [0, 40], sizes = [8, 8], strides = [1, 1]} : vector<8x96xf32> to vector<8x8xf32>
    %54 = vector.shape_cast %53 : vector<8x8xf32> to vector<1x8x8xf32>
    %55 = vector.extract_strided_slice %31 {offsets = [0, 72], sizes = [8, 8], strides = [1, 1]} : vector<8x96xf32> to vector<8x8xf32>
    %56 = vector.shape_cast %55 : vector<8x8xf32> to vector<1x8x8xf32>
    "tpu.trace_start"() <{level = 10 : i32, message = "bqd,bkd->bqk"}> : () -> ()
    %cst_19 = arith.constant dense<0.000000e+00> : vector<1x8x8xf32>
    %57 = tpu.matmul %52, %54, %cst_19 {dimension_numbers = #tpu.dot_dimension_numbers<[2], [2], [1], [1], [0, 0, 0, 1, 1, 1], [0], [0]>} : vector<1x8x8xf32>, vector<1x8x8xf32>, vector<1x8x8xf32> -> vector<1x8x8xf32>
    "tpu.trace_stop"() : () -> ()
    %cst_20 = arith.constant dense<0xFF800000> : vector<1x8xf32>
    %58 = vector.multi_reduction <maximumf>, %57, %cst_20 [2] : vector<1x8x8xf32> to vector<1x8xf32>
    %59 = vector.shape_cast %58 : vector<1x8xf32> to vector<1x8x1xf32>
    %60 = vector.broadcast %59 : vector<1x8x1xf32> to vector<1x8x8xf32>
    %61 = arith.subf %57, %60 : vector<1x8x8xf32>
    %62 = math.exp %61 : vector<1x8x8xf32>
    %cst_21 = arith.constant dense<0.000000e+00> : vector<1x8xf32>
    %63 = vector.multi_reduction <add>, %62, %cst_21 [2] : vector<1x8x8xf32> to vector<1x8xf32>
    %64 = vector.shape_cast %63 : vector<1x8xf32> to vector<1x8x1xf32>
    %65 = tpu.reciprocal %64 {approx = true} : vector<1x8x1xf32> -> vector<1x8x1xf32>
    %66 = vector.broadcast %65 : vector<1x8x1xf32> to vector<1x8x8xf32>
    %67 = arith.mulf %62, %66 : vector<1x8x8xf32>
    "tpu.trace_start"() <{level = 10 : i32, message = "bqk,bkd->bqd"}> : () -> ()
    %cst_22 = arith.constant dense<0.000000e+00> : vector<1x8x8xf32>
    %68 = tpu.matmul %67, %56, %cst_22 {dimension_numbers = #tpu.dot_dimension_numbers<[2], [1], [1], [2], [0, 0, 0, 1, 1, 2], [0], [0]>} : vector<1x8x8xf32>, vector<1x8x8xf32>, vector<1x8x8xf32> -> vector<1x8x8xf32>
    "tpu.trace_stop"() : () -> ()
    %69 = vector.shape_cast %68 : vector<1x8x8xf32> to vector<8x8xf32>
    %70 = vector.extract_strided_slice %31 {offsets = [0, 16], sizes = [8, 8], strides = [1, 1]} : vector<8x96xf32> to vector<8x8xf32>
    %71 = vector.shape_cast %70 : vector<8x8xf32> to vector<1x8x8xf32>
    %72 = vector.extract_strided_slice %31 {offsets = [0, 48], sizes = [8, 8], strides = [1, 1]} : vector<8x96xf32> to vector<8x8xf32>
    %73 = vector.shape_cast %72 : vector<8x8xf32> to vector<1x8x8xf32>
    %74 = vector.extract_strided_slice %31 {offsets = [0, 80], sizes = [8, 8], strides = [1, 1]} : vector<8x96xf32> to vector<8x8xf32>
    %75 = vector.shape_cast %74 : vector<8x8xf32> to vector<1x8x8xf32>
    "tpu.trace_start"() <{level = 10 : i32, message = "bqd,bkd->bqk"}> : () -> ()
    %cst_23 = arith.constant dense<0.000000e+00> : vector<1x8x8xf32>
    %76 = tpu.matmul %71, %73, %cst_23 {dimension_numbers = #tpu.dot_dimension_numbers<[2], [2], [1], [1], [0, 0, 0, 1, 1, 1], [0], [0]>} : vector<1x8x8xf32>, vector<1x8x8xf32>, vector<1x8x8xf32> -> vector<1x8x8xf32>
    "tpu.trace_stop"() : () -> ()
    %cst_24 = arith.constant dense<0xFF800000> : vector<1x8xf32>
    %77 = vector.multi_reduction <maximumf>, %76, %cst_24 [2] : vector<1x8x8xf32> to vector<1x8xf32>
    %78 = vector.shape_cast %77 : vector<1x8xf32> to vector<1x8x1xf32>
    %79 = vector.broadcast %78 : vector<1x8x1xf32> to vector<1x8x8xf32>
    %80 = arith.subf %76, %79 : vector<1x8x8xf32>
    %81 = math.exp %80 : vector<1x8x8xf32>
    %cst_25 = arith.constant dense<0.000000e+00> : vector<1x8xf32>
    %82 = vector.multi_reduction <add>, %81, %cst_25 [2] : vector<1x8x8xf32> to vector<1x8xf32>
    %83 = vector.shape_cast %82 : vector<1x8xf32> to vector<1x8x1xf32>
    %84 = tpu.reciprocal %83 {approx = true} : vector<1x8x1xf32> -> vector<1x8x1xf32>
    %85 = vector.broadcast %84 : vector<1x8x1xf32> to vector<1x8x8xf32>
    %86 = arith.mulf %81, %85 : vector<1x8x8xf32>
    "tpu.trace_start"() <{level = 10 : i32, message = "bqk,bkd->bqd"}> : () -> ()
    %cst_26 = arith.constant dense<0.000000e+00> : vector<1x8x8xf32>
    %87 = tpu.matmul %86, %75, %cst_26 {dimension_numbers = #tpu.dot_dimension_numbers<[2], [1], [1], [2], [0, 0, 0, 1, 1, 2], [0], [0]>} : vector<1x8x8xf32>, vector<1x8x8xf32>, vector<1x8x8xf32> -> vector<1x8x8xf32>
    "tpu.trace_stop"() : () -> ()
    %88 = vector.shape_cast %87 : vector<1x8x8xf32> to vector<8x8xf32>
    %89 = vector.extract_strided_slice %31 {offsets = [0, 24], sizes = [8, 8], strides = [1, 1]} : vector<8x96xf32> to vector<8x8xf32>
    %90 = vector.shape_cast %89 : vector<8x8xf32> to vector<1x8x8xf32>
    %91 = vector.extract_strided_slice %31 {offsets = [0, 56], sizes = [8, 8], strides = [1, 1]} : vector<8x96xf32> to vector<8x8xf32>
    %92 = vector.shape_cast %91 : vector<8x8xf32> to vector<1x8x8xf32>
    %93 = vector.extract_strided_slice %31 {offsets = [0, 88], sizes = [8, 8], strides = [1, 1]} : vector<8x96xf32> to vector<8x8xf32>
    %94 = vector.shape_cast %93 : vector<8x8xf32> to vector<1x8x8xf32>
    "tpu.trace_start"() <{level = 10 : i32, message = "bqd,bkd->bqk"}> : () -> ()
    %cst_27 = arith.constant dense<0.000000e+00> : vector<1x8x8xf32>
    %95 = tpu.matmul %90, %92, %cst_27 {dimension_numbers = #tpu.dot_dimension_numbers<[2], [2], [1], [1], [0, 0, 0, 1, 1, 1], [0], [0]>} : vector<1x8x8xf32>, vector<1x8x8xf32>, vector<1x8x8xf32> -> vector<1x8x8xf32>
    "tpu.trace_stop"() : () -> ()
    %cst_28 = arith.constant dense<0xFF800000> : vector<1x8xf32>
    %96 = vector.multi_reduction <maximumf>, %95, %cst_28 [2] : vector<1x8x8xf32> to vector<1x8xf32>
    %97 = vector.shape_cast %96 : vector<1x8xf32> to vector<1x8x1xf32>
    %98 = vector.broadcast %97 : vector<1x8x1xf32> to vector<1x8x8xf32>
    %99 = arith.subf %95, %98 : vector<1x8x8xf32>
    %100 = math.exp %99 : vector<1x8x8xf32>
    %cst_29 = arith.constant dense<0.000000e+00> : vector<1x8xf32>
    %101 = vector.multi_reduction <add>, %100, %cst_29 [2] : vector<1x8x8xf32> to vector<1x8xf32>
    %102 = vector.shape_cast %101 : vector<1x8xf32> to vector<1x8x1xf32>
    %103 = tpu.reciprocal %102 {approx = true} : vector<1x8x1xf32> -> vector<1x8x1xf32>
    %104 = vector.broadcast %103 : vector<1x8x1xf32> to vector<1x8x8xf32>
    %105 = arith.mulf %100, %104 : vector<1x8x8xf32>
    "tpu.trace_start"() <{level = 10 : i32, message = "bqk,bkd->bqd"}> : () -> ()
    %cst_30 = arith.constant dense<0.000000e+00> : vector<1x8x8xf32>
    %106 = tpu.matmul %105, %94, %cst_30 {dimension_numbers = #tpu.dot_dimension_numbers<[2], [1], [1], [2], [0, 0, 0, 1, 1, 2], [0], [0]>} : vector<1x8x8xf32>, vector<1x8x8xf32>, vector<1x8x8xf32> -> vector<1x8x8xf32>
    "tpu.trace_stop"() : () -> ()
    %107 = vector.shape_cast %106 : vector<1x8x8xf32> to vector<8x8xf32>
    %108 = tpu.concatenate %50, %69, %88, %107 in 1 : vector<8x8xf32>, vector<8x8xf32>, vector<8x8xf32>, vector<8x8xf32> -> vector<8x32xf32>
    %109 = arith.truncf %108 : vector<8x32xf32> to vector<8x32xbf16>
    %c0_31 = arith.constant 0 : index
    %c0_32 = arith.constant 0 : index
    %110 = vector.load %arg6[%c0_31, %c0_32] : memref<32x32xbf16, #tpu.memory_space<vmem>>, vector<32x32xbf16>
    %cst_33 = arith.constant dense<0.000000e+00> : vector<8x32xf32>
    %111 = tpu.matmul %109, %110, %cst_33 {dimension_numbers = #tpu.dot_dimension_numbers<[1], [0], [0], [1], [0, 0, 1, 1], [], []>} : vector<8x32xbf16>, vector<32x32xbf16>, vector<8x32xf32> -> vector<8x32xf32>
    %c0_34 = arith.constant 0 : index
    %c0_35 = arith.constant 0 : index
    %112 = vector.load %arg7[%c0_34, %c0_35] : memref<1x32xf32, #tpu.memory_space<vmem>>, vector<1x32xf32>
    %113 = vector.broadcast %112 : vector<1x32xf32> to vector<8x32xf32>
    %114 = arith.addf %111, %113 : vector<8x32xf32>
    %115 = arith.addf %25, %114 : vector<8x32xf32>
    %cst_36 = arith.constant dense<0.000000e+00> : vector<8xf32>
    %116 = vector.multi_reduction <add>, %115, %cst_36 [1] : vector<8x32xf32> to vector<8xf32>
    %117 = vector.shape_cast %116 : vector<8xf32> to vector<8x1xf32>
    %cst_37 = arith.constant 3.200000e+01 : f32
    %118 = vector.broadcast %cst_37 : f32 to vector<8x1xf32>
    %119 = arith.divf %117, %118 : vector<8x1xf32>
    %120 = vector.broadcast %119 : vector<8x1xf32> to vector<8x32xf32>
    %121 = arith.subf %115, %120 : vector<8x32xf32>
    %122 = arith.mulf %121, %121 : vector<8x32xf32>
    %cst_38 = arith.constant dense<0.000000e+00> : vector<8xf32>
    %123 = vector.multi_reduction <add>, %122, %cst_38 [1] : vector<8x32xf32> to vector<8xf32>
    %124 = vector.shape_cast %123 : vector<8xf32> to vector<8x1xf32>
    %cst_39 = arith.constant 3.200000e+01 : f32
    %125 = vector.broadcast %cst_39 : f32 to vector<8x1xf32>
    %126 = arith.divf %124, %125 : vector<8x1xf32>
    %127 = vector.broadcast %119 : vector<8x1xf32> to vector<8x32xf32>
    %128 = arith.subf %115, %127 : vector<8x32xf32>
    %cst_40 = arith.constant 9.99999974E-6 : f32
    %129 = vector.broadcast %cst_40 : f32 to vector<8x1xf32>
    %130 = arith.addf %126, %129 : vector<8x1xf32>
    %131 = math.rsqrt %130 : vector<8x1xf32>
    %132 = vector.broadcast %131 : vector<8x1xf32> to vector<8x32xf32>
    %133 = arith.mulf %128, %132 : vector<8x32xf32>
    %c0_41 = arith.constant 0 : index
    %c0_42 = arith.constant 0 : index
    %134 = vector.load %arg8[%c0_41, %c0_42] : memref<1x32xf32, #tpu.memory_space<vmem>>, vector<1x32xf32>
    %135 = vector.broadcast %134 : vector<1x32xf32> to vector<8x32xf32>
    %136 = arith.mulf %133, %135 : vector<8x32xf32>
    %c0_43 = arith.constant 0 : index
    %c0_44 = arith.constant 0 : index
    %137 = vector.load %arg9[%c0_43, %c0_44] : memref<1x32xf32, #tpu.memory_space<vmem>>, vector<1x32xf32>
    %138 = vector.broadcast %137 : vector<1x32xf32> to vector<8x32xf32>
    %139 = arith.addf %136, %138 : vector<8x32xf32>
    %140 = arith.truncf %139 : vector<8x32xf32> to vector<8x32xbf16>
    %c0_45 = arith.constant 0 : index
    %c0_46 = arith.constant 0 : index
    %141 = vector.load %arg10[%c0_45, %c0_46] : memref<32x64xbf16, #tpu.memory_space<vmem>>, vector<32x64xbf16>
    %cst_47 = arith.constant dense<0.000000e+00> : vector<8x64xf32>
    %142 = tpu.matmul %140, %141, %cst_47 {dimension_numbers = #tpu.dot_dimension_numbers<[1], [0], [0], [1], [0, 0, 1, 1], [], []>} : vector<8x32xbf16>, vector<32x64xbf16>, vector<8x64xf32> -> vector<8x64xf32>
    %c0_48 = arith.constant 0 : index
    %c0_49 = arith.constant 0 : index
    %143 = vector.load %arg11[%c0_48, %c0_49] : memref<1x64xf32, #tpu.memory_space<vmem>>, vector<1x64xf32>
    %144 = vector.broadcast %143 : vector<1x64xf32> to vector<8x64xf32>
    %145 = arith.addf %142, %144 : vector<8x64xf32>
    %cst_50 = arith.constant 5.000000e-01 : f32
    %146 = vector.broadcast %cst_50 : f32 to vector<8x64xf32>
    %147 = arith.mulf %146, %145 : vector<8x64xf32>
    %cst_51 = arith.constant 4.471500e-02 : f32
    %148 = vector.broadcast %cst_51 : f32 to vector<8x64xf32>
    %149 = arith.mulf %148, %145 : vector<8x64xf32>
    %150 = arith.mulf %149, %145 : vector<8x64xf32>
    %151 = arith.mulf %150, %145 : vector<8x64xf32>
    %152 = arith.addf %145, %151 : vector<8x64xf32>
    %cst_52 = arith.constant 0.797884583 : f32
    %153 = vector.broadcast %cst_52 : f32 to vector<8x64xf32>
    %154 = arith.mulf %153, %152 : vector<8x64xf32>
    %155 = math.tanh %154 : vector<8x64xf32>
    %cst_53 = arith.constant 1.000000e+00 : f32
    %156 = vector.broadcast %cst_53 : f32 to vector<8x64xf32>
    %157 = arith.addf %156, %155 : vector<8x64xf32>
    %158 = arith.mulf %147, %157 : vector<8x64xf32>
    %159 = arith.truncf %158 : vector<8x64xf32> to vector<8x64xbf16>
    %c0_54 = arith.constant 0 : index
    %c0_55 = arith.constant 0 : index
    %160 = vector.load %arg12[%c0_54, %c0_55] : memref<64x32xbf16, #tpu.memory_space<vmem>>, vector<64x32xbf16>
    %cst_56 = arith.constant dense<0.000000e+00> : vector<8x32xf32>
    %161 = tpu.matmul %159, %160, %cst_56 {dimension_numbers = #tpu.dot_dimension_numbers<[1], [0], [0], [1], [0, 0, 1, 1], [], []>} : vector<8x64xbf16>, vector<64x32xbf16>, vector<8x32xf32> -> vector<8x32xf32>
    %c0_57 = arith.constant 0 : index
    %c0_58 = arith.constant 0 : index
    %162 = vector.load %arg13[%c0_57, %c0_58] : memref<1x32xf32, #tpu.memory_space<vmem>>, vector<1x32xf32>
    %163 = vector.broadcast %162 : vector<1x32xf32> to vector<8x32xf32>
    %164 = arith.addf %161, %163 : vector<8x32xf32>
    %165 = arith.addf %139, %164 : vector<8x32xf32>
    %cst_59 = arith.constant dense<0.000000e+00> : vector<8xf32>
    %166 = vector.multi_reduction <add>, %165, %cst_59 [1] : vector<8x32xf32> to vector<8xf32>
    %167 = vector.shape_cast %166 : vector<8xf32> to vector<8x1xf32>
    %cst_60 = arith.constant 3.200000e+01 : f32
    %168 = vector.broadcast %cst_60 : f32 to vector<8x1xf32>
    %169 = arith.divf %167, %168 : vector<8x1xf32>
    %170 = vector.broadcast %169 : vector<8x1xf32> to vector<8x32xf32>
    %171 = arith.subf %165, %170 : vector<8x32xf32>
    %172 = arith.mulf %171, %171 : vector<8x32xf32>
    %cst_61 = arith.constant dense<0.000000e+00> : vector<8xf32>
    %173 = vector.multi_reduction <add>, %172, %cst_61 [1] : vector<8x32xf32> to vector<8xf32>
    %174 = vector.shape_cast %173 : vector<8xf32> to vector<8x1xf32>
    %cst_62 = arith.constant 3.200000e+01 : f32
    %175 = vector.broadcast %cst_62 : f32 to vector<8x1xf32>
    %176 = arith.divf %174, %175 : vector<8x1xf32>
    %177 = vector.broadcast %169 : vector<8x1xf32> to vector<8x32xf32>
    %178 = arith.subf %165, %177 : vector<8x32xf32>
    %cst_63 = arith.constant 9.99999974E-6 : f32
    %179 = vector.broadcast %cst_63 : f32 to vector<8x1xf32>
    %180 = arith.addf %176, %179 : vector<8x1xf32>
    %181 = math.rsqrt %180 : vector<8x1xf32>
    %182 = vector.broadcast %181 : vector<8x1xf32> to vector<8x32xf32>
    %183 = arith.mulf %178, %182 : vector<8x32xf32>
    %c0_64 = arith.constant 0 : index
    %c0_65 = arith.constant 0 : index
    %184 = vector.load %arg14[%c0_64, %c0_65] : memref<1x32xf32, #tpu.memory_space<vmem>>, vector<1x32xf32>
    %185 = vector.broadcast %184 : vector<1x32xf32> to vector<8x32xf32>
    %186 = arith.mulf %183, %185 : vector<8x32xf32>
    %c0_66 = arith.constant 0 : index
    %c0_67 = arith.constant 0 : index
    %187 = vector.load %arg15[%c0_66, %c0_67] : memref<1x32xf32, #tpu.memory_space<vmem>>, vector<1x32xf32>
    %188 = vector.broadcast %187 : vector<1x32xf32> to vector<8x32xf32>
    %189 = arith.addf %186, %188 : vector<8x32xf32>
    %190 = vector.shape_cast %189 : vector<8x32xf32> to vector<1x8x32xf32>
    %c0_68 = arith.constant 0 : index
    %c0_69 = arith.constant 0 : index
    %c0_70 = arith.constant 0 : index
    %191 = vector.load %arg16[%c0_68, %c0_69, %c0_70] : memref<1x8x32xf32, #tpu.memory_space<vmem>>, vector<1x8x32xf32>
    tpu.vector_store %arg16[%c0_68, %c0_69, %c0_70], %190 {strides = array<i32>} : memref<1x8x32xf32, #tpu.memory_space<vmem>>, vector<1x8x32xf32>,
    return
  }
  func.func @transform_0(%arg0: i32) -> (i32, i32, i32) {
    %c0_i32 = arith.constant 0 : i32
    %c0_i32_0 = arith.constant 0 : i32
    %c0_i32_1 = arith.constant 0 : i32
    return %arg0, %c0_i32, %c0_i32_0 : i32, i32, i32
  }
  func.func @transform_1(%arg0: i32) -> (i32, i32) {
    %c0_i32 = arith.constant 0 : i32
    %c0_i32_0 = arith.constant 0 : i32
    %c0_i32_1 = arith.constant 0 : i32
    return %c0_i32, %c0_i32_0 : i32, i32
  }
  func.func @transform_2(%arg0: i32) -> (i32, i32) {
    %c0_i32 = arith.constant 0 : i32
    %c0_i32_0 = arith.constant 0 : i32
    %c0_i32_1 = arith.constant 0 : i32
    return %c0_i32, %c0_i32_0 : i32, i32
  }
  func.func @transform_3(%arg0: i32) -> (i32, i32) {
    %c0_i32 = arith.constant 0 : i32
    %c0_i32_0 = arith.constant 0 : i32
    %c0_i32_1 = arith.constant 0 : i32
    return %c0_i32, %c0_i32_0 : i32, i32
  }
  func.func @transform_4(%arg0: i32) -> (i32, i32) {
    %c0_i32 = arith.constant 0 : i32
    %c0_i32_0 = arith.constant 0 : i32
    %c0_i32_1 = arith.constant 0 : i32
    return %c0_i32, %c0_i32_0 : i32, i32
  }
  func.func @transform_5(%arg0: i32) -> (i32, i32) {
    %c0_i32 = arith.constant 0 : i32
    %c0_i32_0 = arith.constant 0 : i32
    %c0_i32_1 = arith.constant 0 : i32
    return %c0_i32, %c0_i32_0 : i32, i32
  }
  func.func @transform_6(%arg0: i32) -> (i32, i32) {
    %c0_i32 = arith.constant 0 : i32
    %c0_i32_0 = arith.constant 0 : i32
    %c0_i32_1 = arith.constant 0 : i32
    return %c0_i32, %c0_i32_0 : i32, i32
  }
  func.func @transform_7(%arg0: i32) -> (i32, i32) {
    %c0_i32 = arith.constant 0 : i32
    %c0_i32_0 = arith.constant 0 : i32
    %c0_i32_1 = arith.constant 0 : i32
    return %c0_i32, %c0_i32_0 : i32, i32
  }
  func.func @transform_8(%arg0: i32) -> (i32, i32) {
    %c0_i32 = arith.constant 0 : i32
    %c0_i32_0 = arith.constant 0 : i32
    %c0_i32_1 = arith.constant 0 : i32
    return %c0_i32, %c0_i32_0 : i32, i32
  }
  func.func @transform_9(%arg0: i32) -> (i32, i32) {
    %c0_i32 = arith.constant 0 : i32
    %c0_i32_0 = arith.constant 0 : i32
    %c0_i32_1 = arith.constant 0 : i32
    return %c0_i32, %c0_i32_0 : i32, i32
  }
  func.func @transform_10(%arg0: i32) -> (i32, i32) {
    %c0_i32 = arith.constant 0 : i32
    %c0_i32_0 = arith.constant 0 : i32
    %c0_i32_1 = arith.constant 0 : i32
    return %c0_i32, %c0_i32_0 : i32, i32
  }
  func.func @transform_11(%arg0: i32) -> (i32, i32) {
    %c0_i32 = arith.constant 0 : i32
    %c0_i32_0 = arith.constant 0 : i32
    %c0_i32_1 = arith.constant 0 : i32
    return %c0_i32, %c0_i32_0 : i32, i32
  }
  func.func @transform_12(%arg0: i32) -> (i32, i32) {
    %c0_i32 = arith.constant 0 : i32
    %c0_i32_0 = arith.constant 0 : i32
    %c0_i32_1 = arith.constant 0 : i32
    return %c0_i32, %c0_i32_0 : i32, i32
  }
  func.func @transform_13(%arg0: i32) -> (i32, i32) {
    %c0_i32 = arith.constant 0 : i32
    %c0_i32_0 = arith.constant 0 : i32
    %c0_i32_1 = arith.constant 0 : i32
    return %c0_i32, %c0_i32_0 : i32, i32
  }
  func.func @transform_14(%arg0: i32) -> (i32, i32) {
    %c0_i32 = arith.constant 0 : i32
    %c0_i32_0 = arith.constant 0 : i32
    %c0_i32_1 = arith.constant 0 : i32
    return %c0_i32, %c0_i32_0 : i32, i32
  }
  func.func @transform_15(%arg0: i32) -> (i32, i32, i32) {
    %c0_i32 = arith.constant 0 : i32
    %c0_i32_0 = arith.constant 0 : i32
    %c0_i32_1 = arith.constant 0 : i32
    return %arg0, %c0_i32, %c0_i32_0 : i32, i32, i32
  }
}

module attributes {stable_mosaic.version = 11 : i64} {
  func.func @mvt_kernel(%arg0: i32, %arg1: memref<1x8x32xf32, #tpu.memory_space<vmem>>, %arg2: memref<1x32xf32, #tpu.memory_space<vmem>>, %arg3: memref<1x32xf32, #tpu.memory_space<vmem>>, %arg4: memref<32x96xbf16, #tpu.memory_space<vmem>>, %arg5: memref<1x96xf32, #tpu.memory_space<vmem>>, %arg6: memref<32x32xbf16, #tpu.memory_space<vmem>>, %arg7: memref<1x32xf32, #tpu.memory_space<vmem>>, %arg8: memref<1x32xf32, #tpu.memory_space<vmem>>, %arg9: memref<1x32xf32, #tpu.memory_space<vmem>>, %arg10: memref<32x64xbf16, #tpu.memory_space<vmem>>, %arg11: memref<1x64xf32, #tpu.memory_space<vmem>>, %arg12: memref<64x32xbf16, #tpu.memory_space<vmem>>, %arg13: memref<1x32xf32, #tpu.memory_space<vmem>>, %arg14: memref<1x32xf32, #tpu.memory_space<vmem>>, %arg15: memref<1x32xf32, #tpu.memory_space<vmem>>, %arg16: memref<1x8x32xf32, #tpu.memory_space<vmem>>) attributes {dimension_semantics = [#tpu.dimension_semantics<parallel>], iteration_bounds = array<i64: 2>, scalar_prefetch = 0 : i64, scratch_operands = 0 : i64, tpu.core_type = #tpu.core_type<tc>, window_params = [{transform_indices = @transform_0, window_bounds = array<i64: 1, 8, 32>}, {pipeline_mode = #tpu.pipeline_mode<synchronous>, transform_indices = @transform_1, window_bounds = array<i64: 1, 32>}, {pipeline_mode = #tpu.pipeline_mode<synchronous>, transform_indices = @transform_2, window_bounds = array<i64: 1, 32>}, {pipeline_mode = #tpu.pipeline_mode<synchronous>, transform_indices = @transform_3, window_bounds = array<i64: 32, 96>}, {pipeline_mode = #tpu.pipeline_mode<synchronous>, transform_indices = @transform_4, window_bounds = array<i64: 1, 96>}, {pipeline_mode = #tpu.pipeline_mode<synchronous>, transform_indices = @transform_5, window_bounds = array<i64: 32, 32>}, {pipeline_mode = #tpu.pipeline_mode<synchronous>, transform_indices = @transform_6, window_bounds = array<i64: 1, 32>}, {pipeline_mode = #tpu.pipeline_mode<synchronous>, transform_indices = @transform_7, window_bounds = array<i64: 1, 32>}, {pipeline_mode = #tpu.pipeline_mode<synchronous>, transform_indices = @transform_8, window_bounds = array<i64: 1, 32>}, {pipeline_mode = #tpu.pipeline_mode<synchronous>, transform_indices = @transform_9, window_bounds = array<i64: 32, 64>}, {pipeline_mode = #tpu.pipeline_mode<synchronous>, transform_indices = @transform_10, window_bounds = array<i64: 1, 64>}, {pipeline_mode = #tpu.pipeline_mode<synchronous>, transform_indices = @transform_11, window_bounds = array<i64: 64, 32>}, {pipeline_mode = #tpu.pipeline_mode<synchronous>, transform_indices = @transform_12, window_bounds = array<i64: 1, 32>}, {pipeline_mode = #tpu.pipeline_mode<synchronous>, transform_indices = @transform_13, window_bounds = array<i64: 1, 32>}, {pipeline_mode = #tpu.pipeline_mode<synchronous>, transform_indices = @transform_14, window_bounds = array<i64: 1, 32>}, {transform_indices = @transform_15, window_bounds = array<i64: 1, 8, 32>}]} {
    %c0 = arith.constant 0 : index
    %c0_0 = arith.constant 0 : index
    %c0_1 = arith.constant 0 : index
    %0 = vector.load %arg1[%c0, %c0_0, %c0_1] : memref<1x8x32xf32, #tpu.memory_space<vmem>>, vector<1x8x32xf32>
    %1 = vector.shape_cast %0 : vector<1x8x32xf32> to vector<8x32xf32>
    %cst = arith.constant dense<0.000000e+00> : vector<8xf32>
    %2 = vector.multi_reduction <add>, %1, %cst [1] : vector<8x32xf32> to vector<8xf32>
    %3 = vector.shape_cast %2 : vector<8xf32> to vector<8x1xf32>
    %cst_2 = arith.constant 3.200000e+01 : f32
    %4 = vector.broadcast %cst_2 : f32 to vector<8x1xf32>
    %5 = arith.divf %3, %4 : vector<8x1xf32>
    %6 = vector.broadcast %5 : vector<8x1xf32> to vector<8x32xf32>
    %7 = arith.subf %1, %6 : vector<8x32xf32>
    %8 = arith.mulf %7, %7 : vector<8x32xf32>
    %cst_3 = arith.constant dense<0.000000e+00> : vector<8xf32>
    %9 = vector.multi_reduction <add>, %8, %cst_3 [1] : vector<8x32xf32> to vector<8xf32>
    %10 = vector.shape_cast %9 : vector<8xf32> to vector<8x1xf32>
    %cst_4 = arith.constant 3.200000e+01 : f32
    %11 = vector.broadcast %cst_4 : f32 to vector<8x1xf32>
    %12 = arith.divf %10, %11 : vector<8x1xf32>
    %13 = vector.broadcast %5 : vector<8x1xf32> to vector<8x32xf32>
    %14 = arith.subf %1, %13 : vector<8x32xf32>
    %cst_5 = arith.constant 9.99999974E-6 : f32
    %15 = vector.broadcast %cst_5 : f32 to vector<8x1xf32>
    %16 = arith.addf %12, %15 : vector<8x1xf32>
    %17 = math.rsqrt %16 : vector<8x1xf32>
    %18 = vector.broadcast %17 : vector<8x1xf32> to vector<8x32xf32>
    %19 = arith.mulf %14, %18 : vector<8x32xf32>
    %c0_6 = arith.constant 0 : index
    %c0_7 = arith.constant 0 : index
    %20 = vector.load %arg2[%c0_6, %c0_7] : memref<1x32xf32, #tpu.memory_space<vmem>>, vector<1x32xf32>
    %21 = vector.broadcast %20 : vector<1x32xf32> to vector<8x32xf32>
    %22 = arith.mulf %19, %21 : vector<8x32xf32>
    %c0_8 = arith.constant 0 : index
    %c0_9 = arith.constant 0 : index
    %23 = vector.load %arg3[%c0_8, %c0_9] : memref<1x32xf32, #tpu.memory_space<vmem>>, vector<1x32xf32>
    %24 = vector.broadcast %23 : vector<1x32xf32> to vector<8x32xf32>
    %25 = arith.addf %22, %24 : vector<8x32xf32>
    %26 = arith.truncf %25 : vector<8x32xf32> to vector<8x32xbf16>
    %c0_10 = arith.constant 0 : index
    %c0_11 = arith.constant 0 : index
    %27 = vector.load %arg4[%c0_10, %c0_11] : memref<32x96xbf16, #tpu.memory_space<vmem>>, vector<32x96xbf16>
    %cst_12 = arith.constant dense<0.000000e+00> : vector<8x96xf32>
    %28 = tpu.matmul %26, %27, %cst_12 {dimension_numbers = #tpu.dot_dimension_numbers<[1], [0], [0], [1], [0, 0, 1, 1], [], []>} : vector<8x32xbf16>, vector<32x96xbf16>, vector<8x96xf32> -> vector<8x96xf32>
    %c0_13 = arith.constant 0 : index
    %c0_14 = arith.constant 0 : index
    %29 = vector.load %arg5[%c0_13, %c0_14] : memref<1x96xf32, #tpu.memory_space<vmem>>, vector<1x96xf32>
    %30 = vector.broadcast %29 : vector<1x96xf32> to vector<8x96xf32>
    %31 = arith.addf %28, %30 : vector<8x96xf32>
    %32 = vector.extract_strided_slice %31 {offsets = [0, 0], sizes = [8, 8], strides = [1, 1]} : vector<8x96xf32> to vector<8x8xf32>
    %33 = vector.shape_cast %32 : vector<8x8xf32> to vector<1x8x8xf32>
    %34 = vector.extract_strided_slice %31 {offsets = [0, 32], sizes = [8, 8], strides = [1, 1]} : vector<8x96xf32> to vector<8x8xf32>
    %35 = vector.shape_cast %34 : vector<8x8xf32> to vector<1x8x8xf32>
    %36 = vector.extract_strided_slice %31 {offsets = [0, 64], sizes = [8, 8], strides = [1, 1]} : vector<8x96xf32> to vector<8x8xf32>
    %37 = vector.shape_cast %36 : vector<8x8xf32> to vector<1x8x8xf32>
    "tpu.trace_start"() <{level = 10 : i32, message = "bqd,bkd->bqk"}> : () -> ()
    %cst_15 = arith.constant dense<0.000000e+00> : vector<1x8x8xf32>
    %38 = tpu.matmul %33, %35, %cst_15 {dimension_numbers = #tpu.dot_dimension_numbers<[2], [2], [1], [1], [0, 0, 0, 1, 1, 1], [0], [0]>} : vector<1x8x8xf32>, vector<1x8x8xf32>, vector<1x8x8xf32> -> vector<1x8x8xf32>
    "tpu.trace_stop"() : () -> ()
    %cst_16 = arith.constant dense<0xFF800000> : vector<1x8xf32>
    %39 = vector.multi_reduction <maximumf>, %38, %cst_16 [2] : vector<1x8x8xf32> to vector<1x8xf32>
    %40 = vector.shape_cast %39 : vector<1x8xf32> to vector<1x8x1xf32>
    %41 = vector.broadcast %40 : vector<1x8x1xf32> to vector<1x8x8xf32>
    %42 = arith.subf %38, %41 : vector<1x8x8xf32>
    %43 = math.exp %42 : vector<1x8x8xf32>
    %cst_17 = arith.constant dense<0.000000e+00> : vector<1x8xf32>
    %44 = vector.multi_reduction <add>, %43, %cst_17 [2] : vector<1x8x8xf32> to vector<1x8xf32>
    %45 = vector.shape_cast %44 : vector<1x8xf32> to vector<1x8x1xf32>
    %46 = tpu.reciprocal %45 {approx = true} : vector<1x8x1xf32> -> vector<1x8x1xf32>
    %47 = vector.broadcast %46 : vector<1x8x1xf32> to vector<1x8x8xf32>
    %48 = arith.mulf %43, %47 : vector<1x8x8xf32>
    "tpu.trace_start"() <{level = 10 : i32, message = "bqk,bkd->bqd"}> : () -> ()
    %cst_18 = arith.constant dense<0.000000e+00> : vector<1x8x8xf32>
    %49 = tpu.matmul %48, %37, %cst_18 {dimension_numbers = #tpu.dot_dimension_numbers<[2], [1], [1], [2], [0, 0, 0, 1, 1, 2], [0], [0]>} : vector<1x8x8xf32>, vector<1x8x8xf32>, vector<1x8x8xf32> -> vector<1x8x8xf32>
    "tpu.trace_stop"() : () -> ()
    %50 = vector.shape_cast %49 : vector<1x8x8xf32> to vector<8x8xf32>
    %51 = vector.extract_strided_slice %31 {offsets = [0, 8], sizes = [8, 8], strides = [1, 1]} : vector<8x96xf32> to vector<8x8xf32>
    %52 = vector.shape_cast %51 : vector<8x8xf32> to vector<1x8x8xf32>
    %53 = vector.extract_strided_slice %31 {offsets = [0, 40], sizes = [8, 8], strides = [1, 1]} : vector<8x96xf32> to vector<8x8xf32>
    %54 = vector.shape_cast %53 : vector<8x8xf32> to vector<1x8x8xf32>
    %55 = vector.extract_strided_slice %31 {offsets = [0, 72], sizes = [8, 8], strides = [1, 1]} : vector<8x96xf32> to vector<8x8xf32>
    %56 = vector.shape_cast %55 : vector<8x8xf32> to vector<1x8x8xf32>
    "tpu.trace_start"() <{level = 10 : i32, message = "bqd,bkd->bqk"}> : () -> ()
    %cst_19 = arith.constant dense<0.000000e+00> : vector<1x8x8xf32>
    %57 = tpu.matmul %52, %54, %cst_19 {dimension_numbers = #tpu.dot_dimension_numbers<[2], [2], [1], [1], [0, 0, 0, 1, 1, 1], [0], [0]>} : vector<1x8x8xf32>, vector<1x8x8xf32>, vector<1x8x8xf32> -> vector<1x8x8xf32>
    "tpu.trace_stop"() : () -> ()
    %cst_20 = arith.constant dense<0xFF800000> : vector<1x8xf32>
    %58 = vector.multi_reduction <maximumf>, %57, %cst_20 [2] : vector<1x8x8xf32> to vector<1x8xf32>
    %59 = vector.shape_cast %58 : vector<1x8xf32> to vector<1x8x1xf32>
    %60 = vector.broadcast %59 : vector<1x8x1xf32> to vector<1x8x8xf32>
    %61 = arith.subf %57, %60 : vector<1x8x8xf32>
    %62 = math.exp %61 : vector<1x8x8xf32>
    %cst_21 = arith.constant dense<0.000000e+00> : vector<1x8xf32>
    %63 = vector.multi_reduction <add>, %62, %cst_21 [2] : vector<1x8x8xf32> to vector<1x8xf32>
    %64 = vector.shape_cast %63 : vector<1x8xf32> to vector<1x8x1xf32>
    %65 = tpu.reciprocal %64 {approx = true} : vector<1x8x1xf32> -> vector<1x8x1xf32>
    %66 = vector.broadcast %65 : vector<1x8x1xf32> to vector<1x8x8xf32>
    %67 = arith.mulf %62, %66 : vector<1x8x8xf32>
    "tpu.trace_start"() <{level = 10 : i32, message = "bqk,bkd->bqd"}> : () -> ()
    %cst_22 = arith.constant dense<0.000000e+00> : vector<1x8x8xf32>
    %68 = tpu.matmul %67, %56, %cst_22 {dimension_numbers = #tpu.dot_dimension_numbers<[2], [1], [1], [2], [0, 0, 0, 1, 1, 2], [0], [0]>} : vector<1x8x8xf32>, vector<1x8x8xf32>, vector<1x8x8xf32> -> vector<1x8x8xf32>
    "tpu.trace_stop"() : () -> ()
    %69 = vector.shape_cast %68 : vector<1x8x8xf32> to vector<8x8xf32>
    %70 = vector.extract_strided_slice %31 {offsets = [0, 16], sizes = [8, 8], strides = [1, 1]} : vector<8x96xf32> to vector<8x8xf32>
    %71 = vector.shape_cast %70 : vector<8x8xf32> to vector<1x8x8xf32>
    %72 = vector.extract_strided_slice %31 {offsets = [0, 48], sizes = [8, 8], strides = [1, 1]} : vector<8x96xf32> to vector<8x8xf32>
    %73 = vector.shape_cast %72 : vector<8x8xf32> to vector<1x8x8xf32>
    %74 = vector.extract_strided_slice %31 {offsets = [0, 80], sizes = [8, 8], strides = [1, 1]} : vector<8x96xf32> to vector<8x8xf32>
    %75 = vector.shape_cast %74 : vector<8x8xf32> to vector<1x8x8xf32>
    "tpu.trace_start"() <{level = 10 : i32, message = "bqd,bkd->bqk"}> : () -> ()
    %cst_23 = arith.constant dense<0.000000e+00> : vector<1x8x8xf32>
    %76 = tpu.matmul %71, %73, %cst_23 {dimension_numbers = #tpu.dot_dimension_numbers<[2], [2], [1], [1], [0, 0, 0, 1, 1, 1], [0], [0]>} : vector<1x8x8xf32>, vector<1x8x8xf32>, vector<1x8x8xf32> -> vector<1x8x8xf32>
    "tpu.trace_stop"() : () -> ()
    %cst_24 = arith.constant dense<0xFF800000> : vector<1x8xf32>
    %77 = vector.multi_reduction <maximumf>, %76, %cst_24 [2] : vector<1x8x8xf32> to vector<1x8xf32>
    %78 = vector.shape_cast %77 : vector<1x8xf32> to vector<1x8x1xf32>
    %79 = vector.broadcast %78 : vector<1x8x1xf32> to vector<1x8x8xf32>
    %80 = arith.subf %76, %79 : vector<1x8x8xf32>
    %81 = math.exp %80 : vector<1x8x8xf32>
    %cst_25 = arith.constant dense<0.000000e+00> : vector<1x8xf32>
    %82 = vector.multi_reduction <add>, %81, %cst_25 [2] : vector<1x8x8xf32> to vector<1x8xf32>
    %83 = vector.shape_cast %82 : vector<1x8xf32> to vector<1x8x1xf32>
    %84 = tpu.reciprocal %83 {approx = true} : vector<1x8x1xf32> -> vector<1x8x1xf32>
    %85 = vector.broadcast %84 : vector<1x8x1xf32> to vector<1x8x8xf32>
    %86 = arith.mulf %81, %85 : vector<1x8x8xf32>
    "tpu.trace_start"() <{level = 10 : i32, message = "bqk,bkd->bqd"}> : () -> ()
    %cst_26 = arith.constant dense<0.000000e+00> : vector<1x8x8xf32>
    %87 = tpu.matmul %86, %75, %cst_26 {dimension_numbers = #tpu.dot_dimension_numbers<[2], [1], [1], [2], [0, 0, 0, 1, 1, 2], [0], [0]>} : vector<1x8x8xf32>, vector<1x8x8xf32>, vector<1x8x8xf32> -> vector<1x8x8xf32>
    "tpu.trace_stop"() : () -> ()
    %88 = vector.shape_cast %87 : vector<1x8x8xf32> to vector<8x8xf32>
    %89 = vector.extract_strided_slice %31 {offsets = [0, 24], sizes = [8, 8], strides = [1, 1]} : vector<8x96xf32> to vector<8x8xf32>
    %90 = vector.shape_cast %89 : vector<8x8xf32> to vector<1x8x8xf32>
    %91 = vector.extract_strided_slice %31 {offsets = [0, 56], sizes = [8, 8], strides = [1, 1]} : vector<8x96xf32> to vector<8x8xf32>
    %92 = vector.shape_cast %91 : vector<8x8xf32> to vector<1x8x8xf32>
    %93 = vector.extract_strided_slice %31 {offsets = [0, 88], sizes = [8, 8], strides = [1, 1]} : vector<8x96xf32> to vector<8x8xf32>
    %94 = vector.shape_cast %93 : vector<8x8xf32> to vector<1x8x8xf32>
    "tpu.trace_start"() <{level = 10 : i32, message = "bqd,bkd->bqk"}> : () -> ()
    %cst_27 = arith.constant dense<0.000000e+00> : vector<1x8x8xf32>
    %95 = tpu.matmul %90, %92, %cst_27 {dimension_numbers = #tpu.dot_dimension_numbers<[2], [2], [1], [1], [0, 0, 0, 1, 1, 1], [0], [0]>} : vector<1x8x8xf32>, vector<1x8x8xf32>, vector<1x8x8xf32> -> vector<1x8x8xf32>
    "tpu.trace_stop"() : () -> ()
    %cst_28 = arith.constant dense<0xFF800000> : vector<1x8xf32>
    %96 = vector.multi_reduction <maximumf>, %95, %cst_28 [2] : vector<1x8x8xf32> to vector<1x8xf32>
    %97 = vector.shape_cast %96 : vector<1x8xf32> to vector<1x8x1xf32>
    %98 = vector.broadcast %97 : vector<1x8x1xf32> to vector<1x8x8xf32>
    %99 = arith.subf %95, %98 : vector<1x8x8xf32>
    %100 = math.exp %99 : vector<1x8x8xf32>
    %cst_29 = arith.constant dense<0.000000e+00> : vector<1x8xf32>
    %101 = vector.multi_reduction <add>, %100, %cst_29 [2] : vector<1x8x8xf32> to vector<1x8xf32>
    %102 = vector.shape_cast %101 : vector<1x8xf32> to vector<1x8x1xf32>
    %103 = tpu.reciprocal %102 {approx = true} : vector<1x8x1xf32> -> vector<1x8x1xf32>
    %104 = vector.broadcast %103 : vector<1x8x1xf32> to vector<1x8x8xf32>
    %105 = arith.mulf %100, %104 : vector<1x8x8xf32>
    "tpu.trace_start"() <{level = 10 : i32, message = "bqk,bkd->bqd"}> : () -> ()
    %cst_30 = arith.constant dense<0.000000e+00> : vector<1x8x8xf32>
    %106 = tpu.matmul %105, %94, %cst_30 {dimension_numbers = #tpu.dot_dimension_numbers<[2], [1], [1], [2], [0, 0, 0, 1, 1, 2], [0], [0]>} : vector<1x8x8xf32>, vector<1x8x8xf32>, vector<1x8x8xf32> -> vector<1x8x8xf32>
    "tpu.trace_stop"() : () -> ()
    %107 = vector.shape_cast %106 : vector<1x8x8xf32> to vector<8x8xf32>
    %108 = tpu.concatenate %50, %69, %88, %107 in 1 : vector<8x8xf32>, vector<8x8xf32>, vector<8x8xf32>, vector<8x8xf32> -> vector<8x32xf32>
    %109 = arith.truncf %108 : vector<8x32xf32> to vector<8x32xbf16>
    %c0_31 = arith.constant 0 : index
    %c0_32 = arith.constant 0 : index
    %110 = vector.load %arg6[%c0_31, %c0_32] : memref<32x32xbf16, #tpu.memory_space<vmem>>, vector<32x32xbf16>
    %cst_33 = arith.constant dense<0.000000e+00> : vector<8x32xf32>
    %111 = tpu.matmul %109, %110, %cst_33 {dimension_numbers = #tpu.dot_dimension_numbers<[1], [0], [0], [1], [0, 0, 1, 1], [], []>} : vector<8x32xbf16>, vector<32x32xbf16>, vector<8x32xf32> -> vector<8x32xf32>
    %c0_34 = arith.constant 0 : index
    %c0_35 = arith.constant 0 : index
    %112 = vector.load %arg7[%c0_34, %c0_35] : memref<1x32xf32, #tpu.memory_space<vmem>>, vector<1x32xf32>
    %113 = vector.broadcast %112 : vector<1x32xf32> to vector<8x32xf32>
    %114 = arith.addf %111, %113 : vector<8x32xf32>
    %115 = arith.addf %25, %114 : vector<8x32xf32>
    %cst_36 = arith.constant dense<0.000000e+00> : vector<8xf32>
    %116 = vector.multi_reduction <add>, %115, %cst_36 [1] : vector<8x32xf32> to vector<8xf32>
    %117 = vector.shape_cast %116 : vector<8xf32> to vector<8x1xf32>
    %cst_37 = arith.constant 3.200000e+01 : f32
    %118 = vector.broadcast %cst_37 : f32 to vector<8x1xf32>
    %119 = arith.divf %117, %118 : vector<8x1xf32>
    %120 = vector.broadcast %119 : vector<8x1xf32> to vector<8x32xf32>
    %121 = arith.subf %115, %120 : vector<8x32xf32>
    %122 = arith.mulf %121, %121 : vector<8x32xf32>
    %cst_38 = arith.constant dense<0.000000e+00> : vector<8xf32>
    %123 = vector.multi_reduction <add>, %122, %cst_38 [1] : vector<8x32xf32> to vector<8xf32>
    %124 = vector.shape_cast %123 : vector<8xf32> to vector<8x1xf32>
    %cst_39 = arith.constant 3.200000e+01 : f32
    %125 = vector.broadcast %cst_39 : f32 to vector<8x1xf32>
    %126 = arith.divf %124, %125 : vector<8x1xf32>
    %127 = vector.broadcast %119 : vector<8x1xf32> to vector<8x32xf32>
    %128 = arith.subf %115, %127 : vector<8x32xf32>
    %cst_40 = arith.constant 9.99999974E-6 : f32
    %129 = vector.broadcast %cst_40 : f32 to vector<8x1xf32>
    %130 = arith.addf %126, %129 : vector<8x1xf32>
    %131 = math.rsqrt %130 : vector<8x1xf32>
    %132 = vector.broadcast %131 : vector<8x1xf32> to vector<8x32xf32>
    %133 = arith.mulf %128, %132 : vector<8x32xf32>
    %c0_41 = arith.constant 0 : index
    %c0_42 = arith.constant 0 : index
    %134 = vector.load %arg8[%c0_41, %c0_42] : memref<1x32xf32, #tpu.memory_space<vmem>>, vector<1x32xf32>
    %135 = vector.broadcast %134 : vector<1x32xf32> to vector<8x32xf32>
    %136 = arith.mulf %133, %135 : vector<8x32xf32>
    %c0_43 = arith.constant 0 : index
    %c0_44 = arith.constant 0 : index
    %137 = vector.load %arg9[%c0_43, %c0_44] : memref<1x32xf32, #tpu.memory_space<vmem>>, vector<1x32xf32>
    %138 = vector.broadcast %137 : vector<1x32xf32> to vector<8x32xf32>
    %139 = arith.addf %136, %138 : vector<8x32xf32>
    %140 = arith.truncf %139 : vector<8x32xf32> to vector<8x32xbf16>
    %c0_45 = arith.constant 0 : index
    %c0_46 = arith.constant 0 : index
    %141 = vector.load %arg10[%c0_45, %c0_46] : memref<32x64xbf16, #tpu.memory_space<vmem>>, vector<32x64xbf16>
    %cst_47 = arith.constant dense<0.000000e+00> : vector<8x64xf32>
    %142 = tpu.matmul %140, %141, %cst_47 {dimension_numbers = #tpu.dot_dimension_numbers<[1], [0], [0], [1], [0, 0, 1, 1], [], []>} : vector<8x32xbf16>, vector<32x64xbf16>, vector<8x64xf32> -> vector<8x64xf32>
    %c0_48 = arith.constant 0 : index
    %c0_49 = arith.constant 0 : index
    %143 = vector.load %arg11[%c0_48, %c0_49] : memref<1x64xf32, #tpu.memory_space<vmem>>, vector<1x64xf32>
    %144 = vector.broadcast %143 : vector<1x64xf32> to vector<8x64xf32>
    %145 = arith.addf %142, %144 : vector<8x64xf32>
    %cst_50 = arith.constant 5.000000e-01 : f32
    %146 = vector.broadcast %cst_50 : f32 to vector<8x64xf32>
    %147 = arith.mulf %146, %145 : vector<8x64xf32>
    %cst_51 = arith.constant 4.471500e-02 : f32
    %148 = vector.broadcast %cst_51 : f32 to vector<8x64xf32>
    %149 = arith.mulf %148, %145 : vector<8x64xf32>
    %150 = arith.mulf %149, %145 : vector<8x64xf32>
    %151 = arith.mulf %150, %145 : vector<8x64xf32>
    %152 = arith.addf %145, %151 : vector<8x64xf32>
    %cst_52 = arith.constant 0.797884583 : f32
    %153 = vector.broadcast %cst_52 : f32 to vector<8x64xf32>
    %154 = arith.mulf %153, %152 : vector<8x64xf32>
    %155 = math.tanh %154 : vector<8x64xf32>
    %cst_53 = arith.constant 1.000000e+00 : f32
    %156 = vector.broadcast %cst_53 : f32 to vector<8x64xf32>
    %157 = arith.addf %156, %155 : vector<8x64xf32>
    %158 = arith.mulf %147, %157 : vector<8x64xf32>
    %159 = arith.truncf %158 : vector<8x64xf32> to vector<8x64xbf16>
    %c0_54 = arith.constant 0 : index
    %c0_55 = arith.constant 0 : index
    %160 = vector.load %arg12[%c0_54, %c0_55] : memref<64x32xbf16, #tpu.memory_space<vmem>>, vector<64x32xbf16>
    %cst_56 = arith.constant dense<0.000000e+00> : vector<8x32xf32>
    %161 = tpu.matmul %159, %160, %cst_56 {dimension_numbers = #tpu.dot_dimension_numbers<[1], [0], [0], [1], [0, 0, 1, 1], [], []>} : vector<8x64xbf16>, vector<64x32xbf16>, vector<8x32xf32> -> vector<8x32xf32>
    %c0_57 = arith.constant 0 : index
    %c0_58 = arith.constant 0 : index
    %162 = vector.load %arg13[%c0_57, %c0_58] : memref<1x32xf32, #tpu.memory_space<vmem>>, vector<1x32xf32>
    %163 = vector.broadcast %162 : vector<1x32xf32> to vector<8x32xf32>
    %164 = arith.addf %161, %163 : vector<8x32xf32>
    %165 = arith.addf %139, %164 : vector<8x32xf32>
    %cst_59 = arith.constant dense<0.000000e+00> : vector<8xf32>
    %166 = vector.multi_reduction <add>, %165, %cst_59 [1] : vector<8x32xf32> to vector<8xf32>
    %167 = vector.shape_cast %166 : vector<8xf32> to vector<8x1xf32>
    %cst_60 = arith.constant 3.200000e+01 : f32
    %168 = vector.broadcast %cst_60 : f32 to vector<8x1xf32>
    %169 = arith.divf %167, %168 : vector<8x1xf32>
    %170 = vector.broadcast %169 : vector<8x1xf32> to vector<8x32xf32>
    %171 = arith.subf %165, %170 : vector<8x32xf32>
    %172 = arith.mulf %171, %171 : vector<8x32xf32>
    %cst_61 = arith.constant dense<0.000000e+00> : vector<8xf32>
    %173 = vector.multi_reduction <add>, %172, %cst_61 [1] : vector<8x32xf32> to vector<8xf32>
    %174 = vector.shape_cast %173 : vector<8xf32> to vector<8x1xf32>
    %cst_62 = arith.constant 3.200000e+01 : f32
    %175 = vector.broadcast %cst_62 : f32 to vector<8x1xf32>
    %176 = arith.divf %174, %175 : vector<8x1xf32>
    %177 = vector.broadcast %169 : vector<8x1xf32> to vector<8x32xf32>
    %178 = arith.subf %165, %177 : vector<8x32xf32>
    %cst_63 = arith.constant 9.99999974E-6 : f32
    %179 = vector.broadcast %cst_63 : f32 to vector<8x1xf32>
    %180 = arith.addf %176, %179 : vector<8x1xf32>
    %181 = math.rsqrt %180 : vector<8x1xf32>
    %182 = vector.broadcast %181 : vector<8x1xf32> to vector<8x32xf32>
    %183 = arith.mulf %178, %182 : vector<8x32xf32>
    %c0_64 = arith.constant 0 : index
    %c0_65 = arith.constant 0 : index
    %184 = vector.load %arg14[%c0_64, %c0_65] : memref<1x32xf32, #tpu.memory_space<vmem>>, vector<1x32xf32>
    %185 = vector.broadcast %184 : vector<1x32xf32> to vector<8x32xf32>
    %186 = arith.mulf %183, %185 : vector<8x32xf32>
    %c0_66 = arith.constant 0 : index
    %c0_67 = arith.constant 0 : index
    %187 = vector.load %arg15[%c0_66, %c0_67] : memref<1x32xf32, #tpu.memory_space<vmem>>, vector<1x32xf32>
    %188 = vector.broadcast %187 : vector<1x32xf32> to vector<8x32xf32>
    %189 = arith.addf %186, %188 : vector<8x32xf32>
    %190 = vector.shape_cast %189 : vector<8x32xf32> to vector<1x8x32xf32>
    %c0_68 = arith.constant 0 : index
    %c0_69 = arith.constant 0 : index
    %c0_70 = arith.constant 0 : index
    %191 = vector.load %arg16[%c0_68, %c0_69, %c0_70] : memref<1x8x32xf32, #tpu.memory_space<vmem>>, vector<1x8x32xf32>
    tpu.vector_store %arg16[%c0_68, %c0_69, %c0_70], %190 {strides = array<i32>} : memref<1x8x32xf32, #tpu.memory_space<vmem>>, vector<1x8x32xf32>,
    return
  }
  func.func @transform_0(%arg0: i32) -> (i32, i32, i32) {
    %c0_i32 = arith.constant 0 : i32
    %c0_i32_0 = arith.constant 0 : i32
    %c0_i32_1 = arith.constant 0 : i32
    return %arg0, %c0_i32, %c0_i32_0 : i32, i32, i32
  }
  func.func @transform_1(%arg0: i32) -> (i32, i32) {
    %c0_i32 = arith.constant 0 : i32
    %c0_i32_0 = arith.constant 0 : i32
    %c0_i32_1 = arith.constant 0 : i32
    return %c0_i32, %c0_i32_0 : i32, i32
  }
  func.func @transform_2(%arg0: i32) -> (i32, i32) {
    %c0_i32 = arith.constant 0 : i32
    %c0_i32_0 = arith.constant 0 : i32
    %c0_i32_1 = arith.constant 0 : i32
    return %c0_i32, %c0_i32_0 : i32, i32
  }
  func.func @transform_3(%arg0: i32) -> (i32, i32) {
    %c0_i32 = arith.constant 0 : i32
    %c0_i32_0 = arith.constant 0 : i32
    %c0_i32_1 = arith.constant 0 : i32
    return %c0_i32, %c0_i32_0 : i32, i32
  }
  func.func @transform_4(%arg0: i32) -> (i32, i32) {
    %c0_i32 = arith.constant 0 : i32
    %c0_i32_0 = arith.constant 0 : i32
    %c0_i32_1 = arith.constant 0 : i32
    return %c0_i32, %c0_i32_0 : i32, i32
  }
  func.func @transform_5(%arg0: i32) -> (i32, i32) {
    %c0_i32 = arith.constant 0 : i32
    %c0_i32_0 = arith.constant 0 : i32
    %c0_i32_1 = arith.constant 0 : i32
    return %c0_i32, %c0_i32_0 : i32, i32
  }
  func.func @transform_6(%arg0: i32) -> (i32, i32) {
    %c0_i32 = arith.constant 0 : i32
    %c0_i32_0 = arith.constant 0 : i32
    %c0_i32_1 = arith.constant 0 : i32
    return %c0_i32, %c0_i32_0 : i32, i32
  }
  func.func @transform_7(%arg0: i32) -> (i32, i32) {
    %c0_i32 = arith.constant 0 : i32
    %c0_i32_0 = arith.constant 0 : i32
    %c0_i32_1 = arith.constant 0 : i32
    return %c0_i32, %c0_i32_0 : i32, i32
  }
  func.func @transform_8(%arg0: i32) -> (i32, i32) {
    %c0_i32 = arith.constant 0 : i32
    %c0_i32_0 = arith.constant 0 : i32
    %c0_i32_1 = arith.constant 0 : i32
    return %c0_i32, %c0_i32_0 : i32, i32
  }
  func.func @transform_9(%arg0: i32) -> (i32, i32) {
    %c0_i32 = arith.constant 0 : i32
    %c0_i32_0 = arith.constant 0 : i32
    %c0_i32_1 = arith.constant 0 : i32
    return %c0_i32, %c0_i32_0 : i32, i32
  }
  func.func @transform_10(%arg0: i32) -> (i32, i32) {
    %c0_i32 = arith.constant 0 : i32
    %c0_i32_0 = arith.constant 0 : i32
    %c0_i32_1 = arith.constant 0 : i32
    return %c0_i32, %c0_i32_0 : i32, i32
  }
  func.func @transform_11(%arg0: i32) -> (i32, i32) {
    %c0_i32 = arith.constant 0 : i32
    %c0_i32_0 = arith.constant 0 : i32
    %c0_i32_1 = arith.constant 0 : i32
    return %c0_i32, %c0_i32_0 : i32, i32
  }
  func.func @transform_12(%arg0: i32) -> (i32, i32) {
    %c0_i32 = arith.constant 0 : i32
    %c0_i32_0 = arith.constant 0 : i32
    %c0_i32_1 = arith.constant 0 : i32
    return %c0_i32, %c0_i32_0 : i32, i32
  }
  func.func @transform_13(%arg0: i32) -> (i32, i32) {
    %c0_i32 = arith.constant 0 : i32
    %c0_i32_0 = arith.constant 0 : i32
    %c0_i32_1 = arith.constant 0 : i32
    return %c0_i32, %c0_i32_0 : i32, i32
  }
  func.func @transform_14(%arg0: i32) -> (i32, i32) {
    %c0_i32 = arith.constant 0 : i32
    %c0_i32_0 = arith.constant 0 : i32
    %c0_i32_1 = arith.constant 0 : i32
    return %c0_i32, %c0_i32_0 : i32, i32
  }
  func.func @transform_15(%arg0: i32) -> (i32, i32, i32) {
    %c0_i32 = arith.constant 0 : i32
    %c0_i32_0 = arith.constant 0 : i32
    %c0_i32_1 = arith.constant 0 : i32
    return %arg0, %c0_i32, %c0_i32_0 : i32, i32, i32
  }
}

</mosaic_0001>

<bundles_post_ra>
// kernel: tpu_custom_call.1
= control target key start
LH: loop header
LB: loop body
LE: loop exit
PB: predicated region body
PF: predicated region fallthrough
CT: control target
= control target key end

     0   :  { %s2663_s0 = inlined_call_operand.vmem [shape: f32[2,8,32], index: 0, kind: input, shape index: {}]   ;;  %s2664_s1 = inlined_call_operand.vmem [shape: f32[1,32], index: 1, kind: input, shape index: {}]   ;;  %s2665_s2 = inlined_call_operand.vmem [shape: f32[1,32], index: 2, kind: input, shape index: {}]   ;;  %s2666_s3 = inlined_call_operand.vmem [shape: bf16[32,96], index: 3, kind: input, shape index: {}]   ;;  %s2667_s4 = inlined_call_operand.hbm [shape: f32[1,96], index: 4, kind: input, shape index: {}]   ;;  %s2668_s5 = inlined_call_operand.vmem [shape: bf16[32,32], index: 5, kind: input, shape index: {}]   ;;  %s2669_s6 = inlined_call_operand.hbm [shape: f32[1,32], index: 6, kind: input, shape index: {}]   ;;  %s2670_s7 = inlined_call_operand.hbm [shape: f32[1,32], index: 7, kind: input, shape index: {}]   ;;  %s2671_s8 = inlined_call_operand.hbm [shape: f32[1,32], index: 8, kind: input, shape index: {}]   ;;  %s2672_s9 = inlined_call_operand.vmem [shape: bf16[32,64], index: 9, kind: input, shape index: {}]   ;;  %s2673_s10 = inlined_call_operand.vmem [shape: f32[1,64], index: 10, kind: input, shape index: {}]   ;;  %s2674_s11 = inlined_call_operand.vmem [shape: bf16[64,32], index: 11, kind: input, shape index: {}]   ;;  %s2675_s12 = inlined_call_operand.vmem [shape: f32[1,32], index: 12, kind: input, shape index: {}]   ;;  %s2676_s13 = inlined_call_operand.vmem [shape: f32[1,32], index: 13, kind: input, shape index: {}]   ;;  %s2677_s14 = inlined_call_operand.vmem [shape: f32[1,32], index: 14, kind: input, shape index: {}]   ;;  %s2678_s15 = inlined_call_operand.hbm [shape: f32[2,8,32], index: 15, kind: output, shape index: {}]  }
   0x1   :  { %2689 = sst [smem:[#allocation21_spill]] %s2676_s13 }
   0x2   :  { %2690 = sst [smem:[#allocation22_spill]] %s2677_s14 }
   0x3   :  { %2691 = sst [smem:[#allocation23_spill]] %s2678_s15 }
   0x4   :  { %20 = vsyncpa [#allocation3], 0 }
   0x5   :  { %21 = vsyncpa [#allocation6], 0 }
   0x6   :  { %22 = vsyncpa [#allocation9], 0 }
   0x7   :  { %23 = vsyncpa [#allocation4], 0 }
   0x8   :  { %25 = vsyncpa [#allocation4 + $0x1], 0  ;;  %s2299_s18 = smov 0   ;;  %s2301_s19 = smov 0  }
   0x9   :  { %s2303_s20 = smov 0   ;;  %s2305_s21 = smov 0  }
   0xa LB: > { %2692 = sst [smem:[#allocation15_spill]] %s2184_s18  ;;  %s2320_s22 = sadd.s32 4294967295, %s2196_s21   ;;  %s2196_s21 = sphi %s2305_s21, %s2718_s21   ;;  %s2192_s20 = sphi %s2303_s20, %s2720_s20   ;;  %s2188_s19 = sphi %s2301_s19, %s2722_s19   ;;  %s2184_s18 = sphi %s2299_s18, %s2721_s18  }
   0xb   : > { %2693 = sst [smem:[#allocation16_spill]] %s2192_s20  ;;  %s1720_s23 = sadd.s32 4294967294, %s2196_s21  }
   0xc   : > { %2694 = sst [smem:[#allocation17_spill]] %s2196_s21  ;;  %s2324_s24 = sadd.s32 1, %s2196_s21  }
   0xd   : > { %2695 = sst [smem:[#allocation18_spill]] %s2324_s24  ;;  %s358_s25 = sadd.s32 1, %s2192_s20 }
   0xe   : > { %s355_s26 = ssub.s32 %s2196_s21, %s2324_s24  ;;  %p368_p0 = scmp.ne.s32.totalorder %s2192_s20, %s2188_s19 }
   0xf   : > { %p356_p1 = scmp.eq.s32.totalorder %s355_s26, 0  ;;  %p369_p2 = scmp.eq.s32.totalorder %s2320_s22, 1 }
  0x10   : > { %p374_p3 = scmp.ne.s32.totalorder %s2188_s19, %s2184_s18  ;;  %p375_p4 = scmp.eq.s32.totalorder %s1720_s23, 1 }
  0x11   : > { %s2335_s27 = scalar_select %p356_p1, %s2192_s20, %s358_s25  }
  0x12   : > { %p2337_p5 = por %p369_p2, %p368_p0  ;;  %p2341_p6 = por %p375_p4, %p374_p3 }
  0x13   : > { %2696 = sst [smem:[#allocation19_spill]] %s2335_s27  ;;  %p1721_p7 = scmp.ge.s32.totalorder %s2196_s21, 1 }
  0x14   : > { %s2697_s28 = scalar_select %p2337_p5, 1, 0 }
  0x15   : > { %s2698_s29 = scalar_select %p2341_p6, 1, 0 }
  0x16   : > { %p382_p8 = scmp.lt.s32.totalorder %s2196_s21, 3  ;;  %p2686_p9 = scmp.eq.s32.totalorder %s2320_s22, 0 }
  0x17   : > { %2699 = sst [smem:[#allocation20_spill]] %s2698_s29  ;;  %s2198_s16 = smov [#allocation5]  }
  0x18   : > { %p2348_p10 = pnand %p1721_p7, %p382_p8  ;;  %s418_s17 = sshll.u32 %s2198_s16, 4  ;;  %s419_s17 = int_to_ptr.vmem [resolvable:$true] %s418_s17 }
  0x19   : > { %s2199_s23 = smov [#allocation2]   ;;  %s2200_s27 = smov [#allocation7]  }
  0x1a   : > { %s2700_s30 = scalar_select %p2348_p10, 1, 0 }
  0x1b   : > { %p1898_p11 = pneg %p2348_p10  ;;  %s404_s25 = sshll.u32 %s2199_s23, 4  ;;  %s2360_s25 = int_to_ptr.vmem [resolvable:$true] %s404_s25 }
  0x1c   : > { %s429_s20 = sshll.u32 %s2200_s27, 4  ;;  %s2010_s16 = scalar_lea.hbm %s2669_s6, 16  ;;  %s2362_s20 = int_to_ptr.vmem [resolvable:$true] %s429_s20 }
  0x1d   : > { %p2356_p12 = pnand %p2686_p9, %p1898_p11  ;;  %p2011_p13 = scmp.ne.s32.totalorder %s2669_s6, %s2010_s16 }
  0x1e   : > { %p2017_p3 = scmp.lt.u32.totalorder %s2010_s16, %s2669_s6 }
  0x1f   : > { %p2372_p0 = pneg %p2356_p12 }
  0x21   : > { %p2013_p1 = pnand %p2372_p0, %p2011_p13 }
  0x23   : > { %p2014_p2 = pneg %p2013_p1 }
  0x25   : > { %p2019_p4 = pnand %p2017_p3, %p2014_p2 }
  0x27   : > { %2022 = shalt.err (!%p2019_p4)
}
  0x28   : > { %s2023_s24 = scalar_lea.vmem %s419_s17, 16  ;;  %s2030_s18 = scalar_lea.vmem %s419_s17, 32 }
  0x29   : > { %p2024_p7 = scmp.ne.s32.totalorder %s419_s17, %s2023_s24  ;;  %p2031_p9 = scmp.lt.s32.totalorder %s419_s17, %s419_s17 }
  0x2a   : > { %p2032_p6 = scmp.lt.s32.totalorder %s2030_s18, %s2023_s24 }
  0x2b   : > { %p2026_p8 = pnand %p2024_p7, %p2372_p0 }
  0x2c   : > { %p2033_p5 = por %p2032_p6, %p2031_p9 }
  0x2d   : > { %p2027_p11 = pneg %p2026_p8 }
  0x2f   : > { %p2034_p10 = pnand %p2033_p5, %p2027_p11 }
  0x31   : > { %2037 = shalt.err (!%p2034_p10)
}
  0x32   : > { %1904 = dma.hbm_to_vmem [thread:$0]  (!%p2356_p12), %s2669_s6, 16, %s419_s17, [#allocation6]  }
  0x33   : > { %s2038_s27 = scalar_lea.hbm %s2667_s4, 16 }
  0x34   : > { %p2039_p13 = scmp.ne.s32.totalorder %s2667_s4, %s2038_s27  ;;  %p2045_p5 = scmp.lt.u32.totalorder %s2038_s27, %s2667_s4 }
  0x36   : > { %p2041_p1 = pnand %p2039_p13, %p2372_p0 }
  0x38   : > { %p2042_p6 = pneg %p2041_p1 }
  0x3a   : > { %p2047_p9 = pnand %p2045_p5, %p2042_p6 }
  0x3c   : > { %2050 = shalt.err (!%p2047_p9)
}
  0x3d   : > { %s2051_s17 = scalar_lea.vmem %s2360_s25, 16  ;;  %s2058_s13 = scalar_lea.vmem %s2360_s25, 32 }
  0x3e   : > { %p2052_p10 = scmp.ne.s32.totalorder %s2360_s25, %s2051_s17  ;;  %p2059_p4 = scmp.lt.s32.totalorder %s2360_s25, %s2360_s25 }
  0x3f   : > { %p2060_p7 = scmp.lt.s32.totalorder %s2058_s13, %s2051_s17 }
  0x40   : > { %p2054_p2 = pnand %p2052_p10, %p2372_p0 }
  0x41   : > { %p2061_p8 = por %p2060_p7, %p2059_p4 }
  0x42   : > { %p2055_p3 = pneg %p2054_p2 }
  0x44   : > { %p2062_p11 = pnand %p2061_p8, %p2055_p3 }
  0x46   : > { %2065 = shalt.err (!%p2062_p11)
}
  0x47   : > { %1901 = dma.hbm_to_vmem [thread:$0]  (!%p2356_p12), %s2667_s4, 16, %s2360_s25, [#allocation3]  }
  0x48   : > { %s2066_s16 = scalar_lea.hbm %s2670_s7, 16 }
  0x49   : > { %p2067_p13 = scmp.ne.s32.totalorder %s2670_s7, %s2066_s16  ;;  %p2073_p5 = scmp.lt.u32.totalorder %s2066_s16, %s2670_s7 }
  0x4b   : > { %p2069_p1 = pnand %p2067_p13, %p2372_p0 }
  0x4d   : > { %p2070_p6 = pneg %p2069_p1 }
  0x4f   : > { %p2075_p9 = pnand %p2073_p5, %p2070_p6 }
  0x51   : > { %2078 = shalt.err (!%p2075_p9)
}
  0x52   : > { %s2079_s25 = scalar_lea.vmem %s2362_s20, 16  ;;  %s2086_s13 = scalar_lea.vmem %s2362_s20, 32 }
  0x53   : > { %p2080_p10 = scmp.ne.s32.totalorder %s2362_s20, %s2079_s25  ;;  %p2087_p4 = scmp.lt.s32.totalorder %s2362_s20, %s2362_s20 }
  0x54   : > { %p2088_p7 = scmp.lt.s32.totalorder %s2086_s13, %s2079_s25 }
  0x55   : > { %p2082_p2 = pnand %p2080_p10, %p2372_p0 }
  0x56   : > { %p2089_p8 = por %p2088_p7, %p2087_p4 }
  0x57   : > { %p2083_p3 = pneg %p2082_p2 }
  0x59   : > { %p2090_p11 = pnand %p2089_p8, %p2083_p3 }
  0x5b   : > { %2093 = shalt.err (!%p2090_p11)
}
  0x5c   : > { %1907 = dma.hbm_to_vmem [thread:$0]  (!%p2356_p12), %s2670_s7, 16, %s2362_s20, [#allocation6]  }
  0x5d   : > { %s2201_s29 = smov [#allocation8]   ;;  %s2094_s24 = scalar_lea.hbm %s2671_s8, 16 }
  0x5e   : > { %s440_s15 = sshll.u32 %s2201_s29, 4  ;;  %p2095_p13 = scmp.ne.s32.totalorder %s2671_s8, %s2094_s24  ;;  %s441_s15 = int_to_ptr.vmem [resolvable:$true] %s440_s15 }
  0x5f   : > { %p2101_p5 = scmp.lt.u32.totalorder %s2094_s24, %s2671_s8 }
  0x60   : > { %p2097_p1 = pnand %p2095_p13, %p2372_p0 }
  0x62   : > { %p2098_p6 = pneg %p2097_p1 }
  0x64   : > { %p2103_p9 = pnand %p2101_p5, %p2098_p6 }
  0x66   : > { %2106 = shalt.err (!%p2103_p9)
}
  0x67   : > { %s2107_s20 = scalar_lea.vmem %s441_s15, 16  ;;  %s2114_s14 = scalar_lea.vmem %s441_s15, 32 }
  0x68   : > { %p2108_p10 = scmp.ne.s32.totalorder %s441_s15, %s2107_s20  ;;  %p2115_p4 = scmp.lt.s32.totalorder %s441_s15, %s441_s15 }
  0x69   : > { %p2116_p7 = scmp.lt.s32.totalorder %s2114_s14, %s2107_s20 }
  0x6a   : > { %p2110_p2 = pnand %p2108_p10, %p2372_p0 }
  0x6b   : > { %p2117_p8 = por %p2116_p7, %p2115_p4 }
  0x6c   : > { %p2111_p3 = pneg %p2110_p2 }
  0x6e   : > { %p2118_p11 = pnand %p2117_p8, %p2111_p3 }
  0x70   : > { %2121 = shalt.err (!%p2118_p11)
}
  0x71   : > { %1910 = dma.hbm_to_vmem [thread:$0]  (!%p2356_p12), %s2671_s8, 16, %s441_s15, [#allocation9]  }
  0x72   : > { %p2703_p13 = scmp.ne.s32.totalorder %s2700_s30, 0 }
  0x73   : > { %p2704_p1 = scmp.eq.s32.totalorder (!%p2703_p13), %s2320_s22, 0 }
  0x74   : > { %478 = sbr.rel (%p2703_p13) target bundleno = 3494 (0xda6), region = 80 }
  0x7b   : > { %2167 = dma.done.wait (%p2704_p1), [#allocation3], 16   ;;  %p2705_p0 = pmov %p2704_p1 }
  0x7d   : > { %2169 = vsyncadd (%p2705_p0), [#allocation3], 4294967280  ;;  %p2706_p6 = pmov %p2705_p0 }
  0x7e   : > { %p2707_p5 = pmov %p2705_p0 }
  0x7f   : > { %2171 = dma.done.wait (%p2706_p6), [#allocation6], 32  }
  0x80   : > { %2173 = vsyncadd (%p2707_p5), [#allocation6], 4294967264  ;;  %p2708_p9 = pmov %p2705_p0 }
  0x81   : > { %p2709_p12 = pmov %p2705_p0 }
  0x82   : > { %2175 = dma.done.wait (%p2708_p9), [#allocation9], 16  }
  0x83   : > { %2177 = vsyncadd (%p2709_p12), [#allocation9], 4294967280  ;;  %p537_p10 = scmp.lt.s32.totalorder %s2320_s22, 1  ;;  %vm543_vm0 = vcmask 261120   ;;  %v1976_v7 = vld [vmem:[%s2666_s3] sm:$0xff]   ;;  %v2202_v8 = vmov 0.0  }
  0x84   : > { %1804 = vmatprep.subr.bf16.mxu0 %v2202_v8  ;;  %1817 = vmatprep.subr.mxu1 %v2202_v8  ;;  %v1977_v9 = vld [vmem:[%s2666_s3 + $0x8] sm:$0xff]   ;;  %vm2203_vm1 = vmmov 0   ;;  %v1734_v14 = vld [vmem:[%s2664_s1] ss:$0 sm:$0xff]  ;;  %s2204_s21 = smov 64   ;;  %s2205_s29 = smov 96  }
  0x85   : > { %s538_s30 = scalar_select %p537_p10, %s2320_s22, 1  ;;  %1805 = vmatpush3.bf16.msra.mxu0 %v1976_v7  ;;  %1808 = vmatprep.mubr.msk.bf16.mxu0 %vm2203_vm1, %v2202_v8  ;;  %v1735_v16 = vld [vmem:[%s2665_s2] ss:$0 sm:$0xff]  ;;  %vm644_vm2 = vcmask 64512   ;;  %vm1314_vm3 = vcmask 130048   ;;  %vm1316_vm4 = vcmask 195584  }
  0x86   : > { %1806 = vmatprep.subr.bf16.mxu0 %v2202_v8  ;;  %1819 = vmatprep.mubr.msk.f32.mxu1 %vm2203_vm1, %v2202_v8  ;;  %v1736_v20 = vld [vmem:[#allocation2] ss:$0 sm:$0xff]  ;;  %s2208_s23 = smov 80   ;;  %s2209_s15 = smov 112   ;;  %vm1531_vm5 = vcmask 523264  }
  0x87   : > { %s1733_s26 = sshll.u32 %s538_s30, 3  ;;  %s2206_s30 = smov 88  }
  0x88   : > { %s540_s16 = scalar_lea.vmem %s2663_s0, %s1733_s26  ;;  %s2207_s26 = smov 120  }
  0x89   : > { %v542_v0 = vld [vmem:[%s540_s16] sm:$0xff]  ;;  %1807 = vmatpush3.bf16.msra.mxu0 %v1977_v9  ;;  %s2210_s16 = smov 72   ;;  %s2211_s27 = smov 104  }
  0x8a   : > { %v544_v1 = vsel %vm543_vm0, %v542_v0, 0.0  ;;  %1812 = vmatprep.subr.mxu0 %v2202_v8  ;;  %s2212_s24 = smov 48   ;;  %s2213_s18 = smov 40  }
  0x8b   : > { %545 = vadd.xlane.f32.xlu0 %v544_v1  ;;  %s2214_s17 = smov 56   ;;  %s2711_s25 = sld [smem:[#allocation22_spill]] }
  0x8c   : > { %s1771_s13 = sshll.u32 %s2320_s22, 7  ;;  %p2713_p3 = scmp.ne.s32.totalorder %s2697_s28, 0 }
  0x8d   : > { %s2218_s22 = smov [#allocation10]  }
 0x118   : > { %v546_v2 = vpop.xlane.xlu0 %545 }
 0x119   : > { %v548_v3 = vmul.f32 0.03125, %v546_v2 }
 0x11b   : > { %v549_v4 = vsub.f32 %v542_v0, %v548_v3 }
 0x11d   : > { %v550_v5 = vmul.f32 %v549_v4, %v549_v4 }
 0x11f   : > { %v551_v6 = vsel %vm543_vm0, %v550_v5, 0.0 }
 0x120   : > { %552 = vadd.xlane.f32.xlu0 %v551_v6 }
 0x1ad   : > { %v553_v10 = vpop.xlane.xlu0 %552 }
 0x1ae   : > { %v554_v11 = vmul.f32 0.03125, %v553_v10 }
 0x1b0   : > { %v555_v12 = vadd.f32 1e-05, %v554_v11 }
 0x1b2   : > { %1986 = vrsqrt.f32 %v555_v12 }
 0x1bc   : > { %v1987_v13 = vpop.eup %1986 }
 0x1bd   : > { %v557_v15 = vmul.f32 %v1987_v13, %v549_v4 }
 0x1bf   : > { %v565_v17 = vmul.f32 %v1734_v14, %v557_v15 }
 0x1c1   : > { %v2495_v18 = vadd.f32 %v1735_v16, %v565_v17 }
 0x1c3   : > { %v574_v19 = vpack.c.bf16 %v2495_v18, %v2495_v18 }
 0x1c5   : > { %1809 = vmatmul.mubr.msk.bf16.vlgmr.msra.gmra.mrb[0].mxu0 %vm543_vm0, %v574_v19 }
 0x1c6   : > { %1814 = vmatprep.mubr.msk.f32.mxu0 %vm2203_vm1, %v2202_v8 }
 0x298   : > { %v635_v21 = vpop.f32.mrb[0].mxu0 }
 0x299   : > { %v2502_v22 = vadd.f32 %v1736_v20, %v635_v21  ;;  %v1810_v23 = vpop.f32.mrb[1].mxu0  ;;  %v1978_v21 = vld [vmem:[%s2668_s5] sm:$0xff]  }
 0x29a   : > { %v638_v24 = vpop.f32.mrb[2].mxu0 }
 0x29b   : > { %730 = vrot.lane.b32.xlu0 %v2502_v22, %s2204_s21  ;;  %642 = vrot.lane.b32.xlu1 %v2502_v22, %s2205_s29  ;;  %v1811_v25 = vpop.f32.mrb[3].mxu0  ;;  %s2215_s21 = smov 8   ;;  %s2216_s29 = smov 16  }
 0x29f   : > { %808 = vrot.lane.b32.xlu0 %v2502_v22, %s2206_s30  ;;  %s2217_s30 = smov 24  }
 0x2a3   : > { %806 = vrot.lane.b32.xlu0 %v2502_v22, %s2207_s26 }
 0x30d   : > { %v731_v26 = vpop.permute.xlu0 %730  ;;  %v643_v27 = vpop.permute.xlu1 %642 }
 0x30e   : > { %1813 = vmatpush3.xpose.msk.msra.mxu0 %vm644_vm2, %v643_v27  ;;  %1818 = vmatpush3.msra.mxu1 %v731_v26 }
 0x30f   : > { %1822 = vmatprep.subr.mxu1 %v2202_v8  ;;  %1827 = vmatprep.subr.mxu0 %v2202_v8 }
 0x311   : > { %1815 = vmatmul.mubr.msk.f32.vlgmr.msra.gmra.mrb[4].mxu0 %vm644_vm2, %v2502_v22  ;;  %v809_v36 = vpop.permute.xlu0 %808 }
 0x312   : > { %1829 = vmatprep.mubr.msk.f32.mxu0 %vm2203_vm1, %v2202_v8 }
 0x315   : > { %v807_v37 = vpop.permute.xlu0 %806 }
 0x3e4   : > { %v715_v28 = vpop.f32.mrb[4].mxu0 }
 0x3e5   : > { %v1816_v29 = vpop.f32.mrb[5].mxu0  ;;  %v719_v30 = vsel %vm644_vm2, %v715_v28, -inf }
 0x3e6   : > { %720 = vmax.xlane.f32.xlu1 %v719_v30 }
 0x3f7   : > { %973 = vrot.lane.b32.xlu1 %v2502_v22, %s2208_s23  ;;  %s534_s23 = sand.u32 1, %s2188_s19  }
 0x473   : > { %v721_v31 = vpop.xlane.xlu1 %720 }
 0x474   : > { %v722_v32 = vsub.f32 %v715_v28, %v721_v31 }
 0x476   : > { %v723_v33 = vmul.f32 1.442695, %v722_v32 }
 0x477   : > { %v974_v42 = vpop.permute.xlu1 %973 }
 0x478   : > { %1988 = vpow2.f32 %v723_v33 }
 0x482   : > { %v1989_v34 = vpop.eup %1988 }
 0x483   : > { %v725_v35 = vsel %vm644_vm2, %v1989_v34, 0.0 }
 0x484   : > { %726 = vadd.xlane.f32.xlu0 %v725_v35 }
 0x49a   : > { %971 = vrot.lane.b32.xlu0 %v2502_v22, %s2209_s15  ;;  %s1732_s15 = sshll.u32 %s534_s23, 3 }
 0x49b   : > { %s536_s20 = scalar_lea.vmem [#allocation10], %s1732_s15  ;;  %s2126_s15 = sshll.u32 %s2218_s22, 4  ;;  %s2127_s15 = int_to_ptr.vmem [resolvable:$false] %s2126_s15 }
 0x49c   : > { %s1620_s14 = sshll.u32 %s536_s20, 4  ;;  %s2622_s14 = int_to_ptr.vmem [resolvable:$true] %s1620_s14 }
 0x49d   : > { %p2129_p8 = scmp.lt.s32.totalorder %s2622_s14, %s2127_s15 }
 0x49e   : > { %1138 = vrot.lane.b32.xlu0 %v2502_v22, %s2210_s16  ;;  %s1607_s16 = scalar_lea.sflag [#allocation4], %s534_s23 }
 0x4a2   : > { %1136 = vrot.lane.b32.xlu0 %v2502_v22, %s2211_s27  ;;  %s2122_s27 = scalar_lea.vmem %s2622_s14, 128 }
 0x4a3   : > { %p2123_p2 = scmp.ne.s32.totalorder %s2622_s14, %s2122_s27 }
 0x4a5   : > { %p2124_p4 = pnand %p2123_p2, %p2713_p3 }
 0x4a7   : > { %p2125_p7 = pneg %p2124_p4 }
 0x511   : > { %v727_v38 = vpop.xlane.xlu0 %726 }
 0x512   : > { %1990 = vrcp.f32 %v727_v38 }
 0x515   : > { %v972_v41 = vpop.permute.xlu0 %971 }
 0x519   : > { %v1139_v43 = vpop.permute.xlu0 %1138 }
 0x51c   : > { %v1991_v39 = vpop.eup %1990 }
 0x51d   : > { %v729_v40 = vmul.f32 %v1991_v39, %v1989_v34  ;;  %v1137_v44 = vpop.permute.xlu0 %1136 }
 0x51f   : > { %1820 = vmatmul.mubr.msk.f32.vlgmr.msra.gmra.mrb[0].mxu1 %vm644_vm2, %v729_v40 }
 0x520   : > { %1823 = vmatpush3.xpose.msk.msra.mxu1 %vm644_vm2, %v809_v36  ;;  %1824 = vmatprep.mubr.msk.f32.mxu1 %vm2203_vm1, %v2202_v8  ;;  %v1752_v36 = vld [vmem:[#allocation5] ss:$0 sm:$0xff] }
 0x521   : > { %1832 = vmatprep.subr.mxu1 %v2202_v8 }
 0x523   : > { %1825 = vmatmul.mubr.msk.f32.vlgmr.msra.gmra.mrb[2].mxu1 %vm644_vm2, %v807_v37 }
 0x524   : > { %1833 = vmatpush3.xpose.msk.msra.mxu1 %vm644_vm2, %v974_v42  ;;  %1834 = vmatprep.mubr.msk.f32.mxu1 %vm2203_vm1, %v2202_v8 }
 0x525   : > { %1842 = vmatprep.subr.mxu1 %v2202_v8 }
 0x527   : > { %1835 = vmatmul.mubr.msk.f32.vlgmr.msra.gmra.mrb[4].mxu1 %vm644_vm2, %v972_v41 }
 0x528   : > { %1843 = vmatpush3.xpose.msk.msra.mxu1 %vm644_vm2, %v1139_v43  ;;  %1844 = vmatprep.mubr.msk.f32.mxu1 %vm2203_vm1, %v2202_v8 }
 0x529   : > { %1852 = vmatprep.subr.bf16.mxu1 %v2202_v8 }
 0x52b   : > { %1845 = vmatmul.mubr.msk.f32.vlgmr.msra.gmra.mrb[6].mxu1 %vm644_vm2, %v1137_v44 }
 0x52c   : > { %1856 = vmatprep.mubr.msk.bf16.mxu1 %vm2203_vm1, %v2202_v8  ;;  %1853 = vmatpush3.bf16.msra.mxu1 %v1978_v21 }
 0x52d   : > { %1854 = vmatprep.subr.bf16.mxu1 %v2202_v8 }
 0x5f2   : > { %v2539_v45 = vpop.f32.mrb[0].mxu1 }
 0x5f3   : > { %v1821_v46 = vpop.f32.mrb[1].mxu1 }
 0x5f6   : > { %v880_v47 = vpop.f32.mrb[2].mxu1 }
 0x5f7   : > { %v1826_v48 = vpop.f32.mrb[3].mxu1  ;;  %v884_v49 = vsel %vm644_vm2, %v880_v47, -inf }
 0x5f8   : > { %885 = vmax.xlane.f32.xlu0 %v884_v49  ;;  %v1980_v49 = vld [vmem:[%s2672_s9] sm:$0xff]  }
 0x5fa   : > { %v1045_v50 = vpop.f32.mrb[4].mxu1 }
 0x5fb   : > { %v1836_v51 = vpop.f32.mrb[5].mxu1  ;;  %v1049_v52 = vsel %vm644_vm2, %v1045_v50, -inf }
 0x5fc   : > { %1050 = vmax.xlane.f32.xlu1 %v1049_v52 }
 0x5fe   : > { %v1210_v53 = vpop.f32.mrb[6].mxu1 }
 0x5ff   : > { %v1846_v54 = vpop.f32.mrb[7].mxu1  ;;  %v1214_v55 = vsel %vm644_vm2, %v1210_v53, -inf }
 0x600   : > { %1215 = vmax.xlane.f32.xlu0 %v1214_v55  ;;  %v1756_v54 = vld [vmem:[#allocation7] ss:$0 sm:$0xff] }
 0x60d   : > { %1060 = vrot.lane.b32.xlu1 %v2502_v22, %s2212_s24  ;;  %s2710_s24 = sld [smem:[#allocation21_spill]] }
 0x685   : > { %v886_v56 = vpop.xlane.xlu0 %885 }
 0x686   : > { %v887_v57 = vsub.f32 %v880_v47, %v886_v56  ;;  %v1757_v56 = vld [vmem:[#allocation8] ss:$0 sm:$0xff] }
 0x688   : > { %v888_v58 = vmul.f32 1.442695, %v887_v57 }
 0x689   : > { %v1051_v59 = vpop.xlane.xlu1 %1050 }
 0x68a   : > { %1992 = vpow2.f32 %v888_v58  ;;  %v1052_v60 = vsub.f32 %v1045_v50, %v1051_v59  ;;  %v1981_v50 = vld [vmem:[%s2672_s9 + $0x8] sm:$0xff]  }
 0x68c   : > { %v1053_v61 = vmul.f32 1.442695, %v1052_v60  ;;  %v1982_v60 = vld [vmem:[%s2674_s11] sm:$0xff]  }
 0x68d   : > { %v1216_v62 = vpop.xlane.xlu0 %1215  ;;  %v1061_v9 = vpop.permute.xlu1 %1060 }
 0x68e   : > { %1994 = vpow2.f32 %v1053_v61  ;;  %v1217_v63 = vsub.f32 %v1210_v53, %v1216_v62  ;;  %v1983_v61 = vld [vmem:[%s2674_s11 + $0x8] sm:$0xff]   ;;  %v1984_v62 = vld [vmem:[%s2674_s11 + $0x10] sm:$0xff]  }
 0x690   : > { %v1218_v0 = vmul.f32 1.442695, %v1217_v63  ;;  %v1985_v63 = vld [vmem:[%s2674_s11 + $0x18] sm:$0xff]  }
 0x692   : > { %1996 = vpow2.f32 %v1218_v0  ;;  %v1758_v0 = vld [vmem:[%s2673_s10] ss:$0 sm:$0xff] }
 0x694   : > { %v1993_v1 = vpop.eup %1992 }
 0x695   : > { %v890_v2 = vsel %vm644_vm2, %v1993_v1, 0.0 }
 0x696   : > { %891 = vadd.xlane.f32.xlu0 %v890_v2 }
 0x698   : > { %v1995_v3 = vpop.eup %1994 }
 0x699   : > { %v1055_v4 = vsel %vm644_vm2, %v1995_v3, 0.0 }
 0x69a   : > { %1056 = vadd.xlane.f32.xlu0 %v1055_v4 }
 0x69c   : > { %v1997_v5 = vpop.eup %1996 }
 0x69d   : > { %v1220_v6 = vsel %vm644_vm2, %v1997_v5, 0.0 }
 0x69e   : > { %1221 = vadd.xlane.f32.xlu1 %v1220_v6 }
 0x6af   : > { %1225 = vrot.lane.b32.xlu1 %v2502_v22, %s2213_s18 }
 0x6b0   : > { %895 = vrot.lane.b32.xlu0 %v2502_v22, %s2214_s17  ;;  %v1979_v22 = vld [vmem:[%s2668_s5 + $0x8] sm:$0xff]  }
 0x6b1   : > { %1855 = vmatpush3.bf16.msra.mxu1 %v1979_v22 }
 0x6b2   : > { %1868 = vmatprep.subr.bf16.mxu1 %v2202_v8 }
 0x723   : > { %v892_v7 = vpop.xlane.xlu0 %891 }
 0x724   : > { %1998 = vrcp.f32 %v892_v7 }
 0x727   : > { %v1057_v10 = vpop.xlane.xlu0 %1056 }
 0x728   : > { %2000 = vrcp.f32 %v1057_v10 }
 0x72b   : > { %v1222_v11 = vpop.xlane.xlu1 %1221  ;;  %v896_v12 = vpop.permute.xlu0 %895 }
 0x72c   : > { %2002 = vrcp.f32 %v1222_v11  ;;  %1828 = vmatpush3.msra.mxu0 %v896_v12 }
 0x72d   : > { %1837 = vmatprep.subr.mxu0 %v2202_v8 }
 0x72e   : > { %v1999_v13 = vpop.eup %1998 }
 0x72f   : > { %v894_v14 = vmul.f32 %v1999_v13, %v1993_v1  ;;  %v1226_v17 = vpop.permute.xlu1 %1225 }
 0x731   : > { %1830 = vmatmul.mubr.msk.f32.vlgmr.msra.gmra.mrb[6].mxu0 %vm644_vm2, %v894_v14 }
 0x732   : > { %v2001_v15 = vpop.eup %2000  ;;  %1838 = vmatpush3.msra.mxu0 %v1061_v9  ;;  %1839 = vmatprep.mubr.msk.f32.mxu0 %vm2203_vm1, %v2202_v8 }
 0x733   : > { %v1059_v16 = vmul.f32 %v2001_v15, %v1995_v3  ;;  %1847 = vmatprep.subr.mxu0 %v2202_v8 }
 0x735   : > { %1840 = vmatmul.mubr.msk.f32.vlgmr.msra.gmra.mrb[8].mxu0 %vm644_vm2, %v1059_v16  ;;  %v1762_v16 = vld [vmem:[%s2675_s12] ss:$0 sm:$0xff] }
 0x736   : > { %v2003_v19 = vpop.eup %2002  ;;  %1848 = vmatpush3.msra.mxu0 %v1226_v17  ;;  %1849 = vmatprep.mubr.msk.f32.mxu0 %vm2203_vm1, %v2202_v8 }
 0x737   : > { %v1224_v20 = vmul.f32 %v2003_v19, %v1997_v5  ;;  %1860 = vmatprep.subr.bf16.mxu0 %v2202_v8 }
 0x739   : > { %1850 = vmatmul.mubr.msk.f32.vlgmr.msra.gmra.mrb[10].mxu0 %vm644_vm2, %v1224_v20 }
 0x73a   : > { %1864 = vmatprep.mubr.msk.bf16.mxu0 %vm2203_vm1, %v2202_v8  ;;  %1861 = vmatpush3.bf16.msra.mxu0 %v1980_v49 }
 0x73b   : > { %1862 = vmatprep.subr.bf16.mxu0 %v2202_v8 }
 0x73e   : > { %1863 = vmatpush3.bf16.msra.mxu0 %v1981_v50 }
 0x804   : > { %v967_v23 = vpop.f32.mrb[6].mxu0 }
 0x805   : > { %1302 = vrot.lane.b32.xlu1 %v967_v23, %s2215_s21  ;;  %v1831_v24 = vpop.f32.mrb[7].mxu0 }
 0x808   : > { %v1132_v25 = vpop.f32.mrb[8].mxu0 }
 0x809   : > { %1306 = vrot.lane.b32.xlu0 %v1132_v25, %s2216_s29  ;;  %v1841_v26 = vpop.f32.mrb[9].mxu0 }
 0x80c   : > { %v1297_v27 = vpop.f32.mrb[10].mxu0 }
 0x80d   : > { %1310 = vrot.lane.b32.xlu1 %v1297_v27, %s2217_s30  ;;  %v1851_v28 = vpop.f32.mrb[11].mxu0  ;;  %s2712_s30 = sld [smem:[#allocation23_spill]] }
 0x813   : > { %s2620_s26 = scalar_lea.hbm %s2712_s30, %s1771_s13 }
 0x877   : > { %v1303_v29 = vpop.permute.xlu1 %1302 }
 0x878   : > { %v1313_v31 = vsel %vm644_vm2, %v2539_v45, %v1303_v29 }
 0x87b   : > { %v1307_v30 = vpop.permute.xlu0 %1306 }
 0x87c   : > { %v1315_v32 = vsel %vm1314_vm3, %v1313_v31, %v1307_v30 }
 0x87f   : > { %v1311_v33 = vpop.permute.xlu1 %1310 }
 0x880   : > { %v1317_v34 = vsel %vm1316_vm4, %v1315_v32, %v1311_v33 }
 0x881   : > { %v1318_v35 = vpack.c.bf16 %v1317_v34, %v1317_v34  ;;  %v1768_v34 = vld [vmem:[%s2710_s24] ss:$0 sm:$0xff]  ;;  %s2128_s24 = scalar_lea.vmem %s2127_s15, 256 }
 0x882   : > { %p2130_p11 = scmp.lt.s32.totalorder %s2128_s24, %s2122_s27 }
 0x883   : > { %1857 = vmatmul.mubr.msk.bf16.vlgmr.msra.gmra.mrb[8].mxu1 %vm543_vm0, %v1318_v35 }
 0x884   : > { %1876 = vmatprep.mubr.msk.bf16.mxu1 %vm2203_vm1, %v2202_v8  ;;  %1869 = vmatpush3.bf16.msra.mxu1 %v1982_v60  ;;  %p2131_p13 = por %p2130_p11, %p2129_p8 }
 0x885   : > { %1870 = vmatprep.subr.bf16.mxu1 %v2202_v8 }
 0x886   : > { %p2132_p1 = pnand %p2131_p13, %p2125_p7 }
 0x888   : > { %1871 = vmatpush3.bf16.msra.mxu1 %v1983_v61 }
 0x889   : > { %1872 = vmatprep.subr.bf16.mxu1 %v2202_v8 }
 0x88c   : > { %1873 = vmatpush3.bf16.msra.mxu1 %v1984_v62 }
 0x88d   : > { %1874 = vmatprep.subr.bf16.mxu1 %v2202_v8 }
 0x890   : > { %1875 = vmatpush3.bf16.msra.mxu1 %v1985_v63 }
 0x956   : > { %v1379_v37 = vpop.f32.mrb[8].mxu1 }
 0x957   : > { %v1380_v38 = vadd.f32 %v1752_v36, %v1379_v37  ;;  %v1858_v39 = vpop.f32.mrb[9].mxu1  ;;  %v1769_v36 = vld [vmem:[%s2711_s25] ss:$0 sm:$0xff] }
 0x958   : > { %v1382_v40 = vpop.f32.mrb[10].mxu1 }
 0x959   : > { %v1859_v41 = vpop.f32.mrb[11].mxu1  ;;  %v1385_v42 = vadd.f32 %v1380_v38, %v2495_v18 }
 0x95b   : > { %v1386_v43 = vsel %vm543_vm0, %v1385_v42, 0.0 }
 0x95c   : > { %1387 = vadd.xlane.f32.xlu0 %v1386_v43 }
 0x9e9   : > { %v1388_v44 = vpop.xlane.xlu0 %1387 }
 0x9ea   : > { %v1389_v45 = vmul.f32 0.03125, %v1388_v44 }
 0x9ec   : > { %v1390_v46 = vsub.f32 %v1385_v42, %v1389_v45 }
 0x9ee   : > { %v1391_v47 = vmul.f32 %v1390_v46, %v1390_v46 }
 0x9f0   : > { %v1392_v48 = vsel %vm543_vm0, %v1391_v47, 0.0 }
 0x9f1   : > { %1393 = vadd.xlane.f32.xlu1 %v1392_v48 }
 0xa7e   : > { %v1394_v18 = vpop.xlane.xlu1 %1393 }
 0xa7f   : > { %v1395_v51 = vmul.f32 0.03125, %v1394_v18 }
 0xa81   : > { %v1396_v52 = vadd.f32 1e-05, %v1395_v51 }
 0xa83   : > { %2004 = vrsqrt.f32 %v1396_v52 }
 0xa8d   : > { %v2005_v53 = vpop.eup %2004 }
 0xa8e   : > { %v1398_v55 = vmul.f32 %v2005_v53, %v1390_v46 }
 0xa90   : > { %v1406_v57 = vmul.f32 %v1756_v54, %v1398_v55 }
 0xa92   : > { %v1414_v58 = vadd.f32 %v1757_v56, %v1406_v57 }
 0xa94   : > { %v1415_v59 = vpack.c.bf16 %v1414_v58, %v1414_v58 }
 0xa96   : > { %1865 = vmatmul.mubr.msk.bf16.vlgmr.msra.gmra.mrb[12].mxu0 %vm543_vm0, %v1415_v59 }
 0xb69   : > { %v1476_v1 = vpop.f32.mrb[12].mxu0 }
 0xb6a   : > { %v1477_v2 = vadd.f32 %v1758_v0, %v1476_v1  ;;  %v1866_v3 = vpop.f32.mrb[13].mxu0 }
 0xb6b   : > { %v1479_v4 = vpop.f32.mrb[14].mxu0 }
 0xb6c   : > { %v1483_v5 = vmul.f32 0.044715, %v1477_v2  ;;  %v1867_v6 = vpop.f32.mrb[15].mxu0  ;;  %v1482_v13 = vmul.f32 0.5, %v1477_v2 }
 0xb6e   : > { %v1484_v7 = vmul.f32 %v1483_v5, %v1477_v2 }
 0xb70   : > { %v1485_v9 = vmul.f32 %v1484_v7, %v1477_v2 }
 0xb72   : > { %v1486_v10 = vadd.f32 %v1485_v9, %v1477_v2 }
 0xb74   : > { %v1487_v11 = vmul.f32 0.7978846, %v1486_v10 }
 0xb76   : > { %2006 = vtanh.f32 %v1487_v11 }
 0xb80   : > { %v2007_v12 = vpop.eup %2006 }
 0xb81   : > { %v1489_v14 = vadd.f32 1.0, %v2007_v12 }
 0xb83   : > { %v1490_v8 = vmul.f32 %v1489_v14, %v1482_v13 }
 0xb85   : > { %v1491_v15 = vpack.c.bf16 %v1490_v8, %v1490_v8 }
 0xb87   : > { %1877 = vmatmul.mubr.msk.bf16.vlgmr.msra.gmra.mrb[12].mxu1 %vm1531_vm5, %v1491_v15 }
 0xc5a   : > { %v1569_v17 = vpop.f32.mrb[12].mxu1 }
 0xc5b   : > { %v1570_v19 = vadd.f32 %v1762_v16, %v1569_v17  ;;  %v1878_v20 = vpop.f32.mrb[13].mxu1 }
 0xc5c   : > { %v1572_v21 = vpop.f32.mrb[14].mxu1 }
 0xc5d   : > { %v1879_v22 = vpop.f32.mrb[15].mxu1  ;;  %v1575_v23 = vadd.f32 %v1570_v19, %v1414_v58 }
 0xc5f   : > { %v1576_v24 = vsel %vm543_vm0, %v1575_v23, 0.0 }
 0xc60   : > { %1577 = vadd.xlane.f32.xlu0 %v1576_v24 }
 0xced   : > { %v1578_v25 = vpop.xlane.xlu0 %1577 }
 0xcee   : > { %v1579_v26 = vmul.f32 0.03125, %v1578_v25 }
 0xcf0   : > { %v1580_v27 = vsub.f32 %v1575_v23, %v1579_v26 }
 0xcf2   : > { %v1581_v28 = vmul.f32 %v1580_v27, %v1580_v27 }
 0xcf4   : > { %v1582_v29 = vsel %vm543_vm0, %v1581_v28, 0.0 }
 0xcf5   : > { %1583 = vadd.xlane.f32.xlu0 %v1582_v29 }
 0xd82   : > { %v1584_v30 = vpop.xlane.xlu0 %1583 }
 0xd83   : > { %v1585_v31 = vmul.f32 0.03125, %v1584_v30 }
 0xd85   : > { %v1586_v32 = vadd.f32 1e-05, %v1585_v31 }
 0xd87   : > { %2008 = vrsqrt.f32 %v1586_v32 }
 0xd91   : > { %v2009_v33 = vpop.eup %2008 }
 0xd92   : > { %v1588_v35 = vmul.f32 %v2009_v33, %v1580_v27 }
 0xd94   : > { %v1596_v37 = vmul.f32 %v1768_v34, %v1588_v35 }
 0xd96   : > { %v1604_v38 = vadd.f32 %v1769_v36, %v1596_v37 }
 0xd98   : > { %1605 = vst.msk [vmem:[%s536_s20] sm:$0xff] %vm543_vm0, %v1604_v38 }
 0xd99   : > { %2135 = shalt.err (!%p2132_p1)
}
 0xd9a   : > { %s2136_s23 = scalar_lea.hbm %s2620_s26, 128  ;;  %s2140_s25 = scalar_lea.hbm %s2712_s30, 256 }
 0xd9b   : > { %p2137_p0 = scmp.ne.s32.totalorder %s2620_s26, %s2136_s23  ;;  %p2141_p9 = scmp.lt.u32.totalorder %s2620_s26, %s2712_s30 }
 0xd9c   : > { %p2142_p12 = scmp.lt.u32.totalorder %s2140_s25, %s2136_s23  ;;  %p2144_p2 = scmp.lt.u32.totalorder %s2136_s23, %s2620_s26 }
 0xd9d   : > { %p2138_p6 = pnand %p2137_p0, %p2713_p3 }
 0xd9e   : > { %p2143_p10 = por %p2142_p12, %p2141_p9 }
 0xd9f   : > { %p2139_p5 = pneg %p2138_p6 }
 0xda0   : > { %p2145_p4 = por %p2144_p2, %p2143_p10 }
 0xda2   : > { %p2146_p7 = pnand %p2145_p4, %p2139_p5 }
 0xda4   : > { %2149 = shalt.err (!%p2146_p7)
}
 0xda5   : > { %1896 = dma.vmem_to_hbm [thread:$0]  (%p2713_p3), %s2622_s14, 128, %s2620_s26, %s1607_s16  }
 0xda6 PF: > { %s2714_s21 = sld [smem:[#allocation17_spill]]  ;;  %s2715_s29 = sld [smem:[#allocation15_spill]] }
 0xda7   : > { %s2716_s27 = sld [smem:[#allocation20_spill]] }
 0xdac   : > { %p1923_p8 = scmp.ge.s32.totalorder %s2714_s21, 2  ;;  %s1632_s22 = sand.u32 1, %s2715_s29  }
 0xdad   : > { %p2717_p11 = scmp.ne.s32.totalorder %s2716_s27, 0  ;;  %s1633_s15 = scalar_lea.sflag [#allocation4], %s1632_s22 }
 0xdaf   : > { %p1912_p13 = pnand %p1923_p8, %p2717_p11 }
 0xdb1   : > { %2179 = dma.done.wait (!%p1912_p13), %s1633_s15, 128  }
 0xdb2   : > { %2181 = vsyncadd (!%p1912_p13), %s1633_s15, 4294967168  ;;  %s2718_s21 = sld [smem:[#allocation18_spill]]  ;;  %s2719_s24 = sld [smem:[#allocation16_spill]] }
 0xdb3   : > { %s2720_s20 = sld [smem:[#allocation19_spill]]  ;;  %s2721_s18 = smov %s2188_s19 }
 0xdb8   : > { %p28_p1 = scmp.ge.s32.totalorder %s2718_s21, 4   ;;  %s2722_s19 = smov %s2719_s24 }
 0xdba   :  { %30 = sbr.rel (!%p28_p1) target bundleno = 10 (0xa), region = 132 }
 0xdc1   :  { %1638 = vsyncpa [#allocation3], 1 }
 0xdc2   :  { %1640 = vsyncpa [#allocation3 + $0x1], 1 }
 0xdc3   :  { %1641 = vsyncpa [#allocation6], 1 }
 0xdc4   :  { %1642 = vsyncpa [#allocation9], 1 }
 0xdc5   :  { %1643 = vsyncpa [#allocation4], 1 }
 0xdc6   :  { %1645 = vsyncpa [#allocation4 + $0x1], 1 }

// kernel: tpu_custom_call.1
= control target key start
LH: loop header
LB: loop body
LE: loop exit
PB: predicated region body
PF: predicated region fallthrough
CT: control target
= control target key end

     0   :  { %s2663_s0 = inlined_call_operand.vmem [shape: f32[2,8,32], index: 0, kind: input, shape index: {}]   ;;  %s2664_s1 = inlined_call_operand.vmem [shape: f32[1,32], index: 1, kind: input, shape index: {}]   ;;  %s2665_s2 = inlined_call_operand.vmem [shape: f32[1,32], index: 2, kind: input, shape index: {}]   ;;  %s2666_s3 = inlined_call_operand.vmem [shape: bf16[32,96], index: 3, kind: input, shape index: {}]   ;;  %s2667_s4 = inlined_call_operand.hbm [shape: f32[1,96], index: 4, kind: input, shape index: {}]   ;;  %s2668_s5 = inlined_call_operand.vmem [shape: bf16[32,32], index: 5, kind: input, shape index: {}]   ;;  %s2669_s6 = inlined_call_operand.hbm [shape: f32[1,32], index: 6, kind: input, shape index: {}]   ;;  %s2670_s7 = inlined_call_operand.hbm [shape: f32[1,32], index: 7, kind: input, shape index: {}]   ;;  %s2671_s8 = inlined_call_operand.hbm [shape: f32[1,32], index: 8, kind: input, shape index: {}]   ;;  %s2672_s9 = inlined_call_operand.vmem [shape: bf16[32,64], index: 9, kind: input, shape index: {}]   ;;  %s2673_s10 = inlined_call_operand.vmem [shape: f32[1,64], index: 10, kind: input, shape index: {}]   ;;  %s2674_s11 = inlined_call_operand.vmem [shape: bf16[64,32], index: 11, kind: input, shape index: {}]   ;;  %s2675_s12 = inlined_call_operand.vmem [shape: f32[1,32], index: 12, kind: input, shape index: {}]   ;;  %s2676_s13 = inlined_call_operand.vmem [shape: f32[1,32], index: 13, kind: input, shape index: {}]   ;;  %s2677_s14 = inlined_call_operand.vmem [shape: f32[1,32], index: 14, kind: input, shape index: {}]   ;;  %s2678_s15 = inlined_call_operand.hbm [shape: f32[2,8,32], index: 15, kind: output, shape index: {}]  }
   0x1   :  { %2689 = sst [smem:[#allocation21_spill]] %s2676_s13 }
   0x2   :  { %2690 = sst [smem:[#allocation22_spill]] %s2677_s14 }
   0x3   :  { %2691 = sst [smem:[#allocation23_spill]] %s2678_s15 }
   0x4   :  { %20 = vsyncpa [#allocation3], 0 }
   0x5   :  { %21 = vsyncpa [#allocation6], 0 }
   0x6   :  { %22 = vsyncpa [#allocation9], 0 }
   0x7   :  { %23 = vsyncpa [#allocation4], 0 }
   0x8   :  { %25 = vsyncpa [#allocation4 + $0x1], 0  ;;  %s2299_s18 = smov 0   ;;  %s2301_s19 = smov 0  }
   0x9   :  { %s2303_s20 = smov 0   ;;  %s2305_s21 = smov 0  }
   0xa LB: > { %2692 = sst [smem:[#allocation15_spill]] %s2184_s18  ;;  %s2320_s22 = sadd.s32 4294967295, %s2196_s21   ;;  %s2196_s21 = sphi %s2305_s21, %s2718_s21   ;;  %s2192_s20 = sphi %s2303_s20, %s2720_s20   ;;  %s2188_s19 = sphi %s2301_s19, %s2722_s19   ;;  %s2184_s18 = sphi %s2299_s18, %s2721_s18  }
   0xb   : > { %2693 = sst [smem:[#allocation16_spill]] %s2192_s20  ;;  %s1720_s23 = sadd.s32 4294967294, %s2196_s21  }
   0xc   : > { %2694 = sst [smem:[#allocation17_spill]] %s2196_s21  ;;  %s2324_s24 = sadd.s32 1, %s2196_s21  }
   0xd   : > { %2695 = sst [smem:[#allocation18_spill]] %s2324_s24  ;;  %s358_s25 = sadd.s32 1, %s2192_s20 }
   0xe   : > { %s355_s26 = ssub.s32 %s2196_s21, %s2324_s24  ;;  %p368_p0 = scmp.ne.s32.totalorder %s2192_s20, %s2188_s19 }
   0xf   : > { %p356_p1 = scmp.eq.s32.totalorder %s355_s26, 0  ;;  %p369_p2 = scmp.eq.s32.totalorder %s2320_s22, 1 }
  0x10   : > { %p374_p3 = scmp.ne.s32.totalorder %s2188_s19, %s2184_s18  ;;  %p375_p4 = scmp.eq.s32.totalorder %s1720_s23, 1 }
  0x11   : > { %s2335_s27 = scalar_select %p356_p1, %s2192_s20, %s358_s25  }
  0x12   : > { %p2337_p5 = por %p369_p2, %p368_p0  ;;  %p2341_p6 = por %p375_p4, %p374_p3 }
  0x13   : > { %2696 = sst [smem:[#allocation19_spill]] %s2335_s27  ;;  %p1721_p7 = scmp.ge.s32.totalorder %s2196_s21, 1 }
  0x14   : > { %s2697_s28 = scalar_select %p2337_p5, 1, 0 }
  0x15   : > { %s2698_s29 = scalar_select %p2341_p6, 1, 0 }
  0x16   : > { %p382_p8 = scmp.lt.s32.totalorder %s2196_s21, 3  ;;  %p2686_p9 = scmp.eq.s32.totalorder %s2320_s22, 0 }
  0x17   : > { %2699 = sst [smem:[#allocation20_spill]] %s2698_s29  ;;  %s2198_s16 = smov [#allocation5]  }
  0x18   : > { %p2348_p10 = pnand %p1721_p7, %p382_p8  ;;  %s418_s17 = sshll.u32 %s2198_s16, 4  ;;  %s419_s17 = int_to_ptr.vmem [resolvable:$true] %s418_s17 }
  0x19   : > { %s2199_s23 = smov [#allocation2]   ;;  %s2200_s27 = smov [#allocation7]  }
  0x1a   : > { %s2700_s30 = scalar_select %p2348_p10, 1, 0 }
  0x1b   : > { %p1898_p11 = pneg %p2348_p10  ;;  %s404_s25 = sshll.u32 %s2199_s23, 4  ;;  %s2360_s25 = int_to_ptr.vmem [resolvable:$true] %s404_s25 }
  0x1c   : > { %s429_s20 = sshll.u32 %s2200_s27, 4  ;;  %s2010_s16 = scalar_lea.hbm %s2669_s6, 16  ;;  %s2362_s20 = int_to_ptr.vmem [resolvable:$true] %s429_s20 }
  0x1d   : > { %p2356_p12 = pnand %p2686_p9, %p1898_p11  ;;  %p2011_p13 = scmp.ne.s32.totalorder %s2669_s6, %s2010_s16 }
  0x1e   : > { %p2017_p3 = scmp.lt.u32.totalorder %s2010_s16, %s2669_s6 }
  0x1f   : > { %p2372_p0 = pneg %p2356_p12 }
  0x21   : > { %p2013_p1 = pnand %p2372_p0, %p2011_p13 }
  0x23   : > { %p2014_p2 = pneg %p2013_p1 }
  0x25   : > { %p2019_p4 = pnand %p2017_p3, %p2014_p2 }
  0x27   : > { %2022 = shalt.err (!%p2019_p4)
}
  0x28   : > { %s2023_s24 = scalar_lea.vmem %s419_s17, 16  ;;  %s2030_s18 = scalar_lea.vmem %s419_s17, 32 }
  0x29   : > { %p2024_p7 = scmp.ne.s32.totalorder %s419_s17, %s2023_s24  ;;  %p2031_p9 = scmp.lt.s32.totalorder %s419_s17, %s419_s17 }
  0x2a   : > { %p2032_p6 = scmp.lt.s32.totalorder %s2030_s18, %s2023_s24 }
  0x2b   : > { %p2026_p8 = pnand %p2024_p7, %p2372_p0 }
  0x2c   : > { %p2033_p5 = por %p2032_p6, %p2031_p9 }
  0x2d   : > { %p2027_p11 = pneg %p2026_p8 }
  0x2f   : > { %p2034_p10 = pnand %p2033_p5, %p2027_p11 }
  0x31   : > { %2037 = shalt.err (!%p2034_p10)
}
  0x32   : > { %1904 = dma.hbm_to_vmem [thread:$0]  (!%p2356_p12), %s2669_s6, 16, %s419_s17, [#allocation6]  }
  0x33   : > { %s2038_s27 = scalar_lea.hbm %s2667_s4, 16 }
  0x34   : > { %p2039_p13 = scmp.ne.s32.totalorder %s2667_s4, %s2038_s27  ;;  %p2045_p5 = scmp.lt.u32.totalorder %s2038_s27, %s2667_s4 }
  0x36   : > { %p2041_p1 = pnand %p2039_p13, %p2372_p0 }
  0x38   : > { %p2042_p6 = pneg %p2041_p1 }
  0x3a   : > { %p2047_p9 = pnand %p2045_p5, %p2042_p6 }
  0x3c   : > { %2050 = shalt.err (!%p2047_p9)
}
  0x3d   : > { %s2051_s17 = scalar_lea.vmem %s2360_s25, 16  ;;  %s2058_s13 = scalar_lea.vmem %s2360_s25, 32 }
  0x3e   : > { %p2052_p10 = scmp.ne.s32.totalorder %s2360_s25, %s2051_s17  ;;  %p2059_p4 = scmp.lt.s32.totalorder %s2360_s25, %s2360_s25 }
  0x3f   : > { %p2060_p7 = scmp.lt.s32.totalorder %s2058_s13, %s2051_s17 }
  0x40   : > { %p2054_p2 = pnand %p2052_p10, %p2372_p0 }
  0x41   : > { %p2061_p8 = por %p2060_p7, %p2059_p4 }
  0x42   : > { %p2055_p3 = pneg %p2054_p2 }
  0x44   : > { %p2062_p11 = pnand %p2061_p8, %p2055_p3 }
  0x46   : > { %2065 = shalt.err (!%p2062_p11)
}
  0x47   : > { %1901 = dma.hbm_to_vmem [thread:$0]  (!%p2356_p12), %s2667_s4, 16, %s2360_s25, [#allocation3]  }
  0x48   : > { %s2066_s16 = scalar_lea.hbm %s2670_s7, 16 }
  0x49   : > { %p2067_p13 = scmp.ne.s32.totalorder %s2670_s7, %s2066_s16  ;;  %p2073_p5 = scmp.lt.u32.totalorder %s2066_s16, %s2670_s7 }
  0x4b   : > { %p2069_p1 = pnand %p2067_p13, %p2372_p0 }
  0x4d   : > { %p2070_p6 = pneg %p2069_p1 }
  0x4f   : > { %p2075_p9 = pnand %p2073_p5, %p2070_p6 }
  0x51   : > { %2078 = shalt.err (!%p2075_p9)
}
  0x52   : > { %s2079_s25 = scalar_lea.vmem %s2362_s20, 16  ;;  %s2086_s13 = scalar_lea.vmem %s2362_s20, 32 }
  0x53   : > { %p2080_p10 = scmp.ne.s32.totalorder %s2362_s20, %s2079_s25  ;;  %p2087_p4 = scmp.lt.s32.totalorder %s2362_s20, %s2362_s20 }
  0x54   : > { %p2088_p7 = scmp.lt.s32.totalorder %s2086_s13, %s2079_s25 }
  0x55   : > { %p2082_p2 = pnand %p2080_p10, %p2372_p0 }
  0x56   : > { %p2089_p8 = por %p2088_p7, %p2087_p4 }
  0x57   : > { %p2083_p3 = pneg %p2082_p2 }
  0x59   : > { %p2090_p11 = pnand %p2089_p8, %p2083_p3 }
  0x5b   : > { %2093 = shalt.err (!%p2090_p11)
}
  0x5c   : > { %1907 = dma.hbm_to_vmem [thread:$0]  (!%p2356_p12), %s2670_s7, 16, %s2362_s20, [#allocation6]  }
  0x5d   : > { %s2201_s29 = smov [#allocation8]   ;;  %s2094_s24 = scalar_lea.hbm %s2671_s8, 16 }
  0x5e   : > { %s440_s15 = sshll.u32 %s2201_s29, 4  ;;  %p2095_p13 = scmp.ne.s32.totalorder %s2671_s8, %s2094_s24  ;;  %s441_s15 = int_to_ptr.vmem [resolvable:$true] %s440_s15 }
  0x5f   : > { %p2101_p5 = scmp.lt.u32.totalorder %s2094_s24, %s2671_s8 }
  0x60   : > { %p2097_p1 = pnand %p2095_p13, %p2372_p0 }
  0x62   : > { %p2098_p6 = pneg %p2097_p1 }
  0x64   : > { %p2103_p9 = pnand %p2101_p5, %p2098_p6 }
  0x66   : > { %2106 = shalt.err (!%p2103_p9)
}
  0x67   : > { %s2107_s20 = scalar_lea.vmem %s441_s15, 16  ;;  %s2114_s14 = scalar_lea.vmem %s441_s15, 32 }
  0x68   : > { %p2108_p10 = scmp.ne.s32.totalorder %s441_s15, %s2107_s20  ;;  %p2115_p4 = scmp.lt.s32.totalorder %s441_s15, %s441_s15 }
  0x69   : > { %p2116_p7 = scmp.lt.s32.totalorder %s2114_s14, %s2107_s20 }
  0x6a   : > { %p2110_p2 = pnand %p2108_p10, %p2372_p0 }
  0x6b   : > { %p2117_p8 = por %p2116_p7, %p2115_p4 }
  0x6c   : > { %p2111_p3 = pneg %p2110_p2 }
  0x6e   : > { %p2118_p11 = pnand %p2117_p8, %p2111_p3 }
  0x70   : > { %2121 = shalt.err (!%p2118_p11)
}
  0x71   : > { %1910 = dma.hbm_to_vmem [thread:$0]  (!%p2356_p12), %s2671_s8, 16, %s441_s15, [#allocation9]  }
  0x72   : > { %p2703_p13 = scmp.ne.s32.totalorder %s2700_s30, 0 }
  0x73   : > { %p2704_p1 = scmp.eq.s32.totalorder (!%p2703_p13), %s2320_s22, 0 }
  0x74   : > { %478 = sbr.rel (%p2703_p13) target bundleno = 3494 (0xda6), region = 80 }
  0x7b   : > { %2167 = dma.done.wait (%p2704_p1), [#allocation3], 16   ;;  %p2705_p0 = pmov %p2704_p1 }
  0x7d   : > { %2169 = vsyncadd (%p2705_p0), [#allocation3], 4294967280  ;;  %p2706_p6 = pmov %p2705_p0 }
  0x7e   : > { %p2707_p5 = pmov %p2705_p0 }
  0x7f   : > { %2171 = dma.done.wait (%p2706_p6), [#allocation6], 32  }
  0x80   : > { %2173 = vsyncadd (%p2707_p5), [#allocation6], 4294967264  ;;  %p2708_p9 = pmov %p2705_p0 }
  0x81   : > { %p2709_p12 = pmov %p2705_p0 }
  0x82   : > { %2175 = dma.done.wait (%p2708_p9), [#allocation9], 16  }
  0x83   : > { %2177 = vsyncadd (%p2709_p12), [#allocation9], 4294967280  ;;  %p537_p10 = scmp.lt.s32.totalorder %s2320_s22, 1  ;;  %vm543_vm0 = vcmask 261120   ;;  %v1976_v7 = vld [vmem:[%s2666_s3] sm:$0xff]   ;;  %v2202_v8 = vmov 0.0  }
  0x84   : > { %1804 = vmatprep.subr.bf16.mxu0 %v2202_v8  ;;  %1817 = vmatprep.subr.mxu1 %v2202_v8  ;;  %v1977_v9 = vld [vmem:[%s2666_s3 + $0x8] sm:$0xff]   ;;  %vm2203_vm1 = vmmov 0   ;;  %v1734_v14 = vld [vmem:[%s2664_s1] ss:$0 sm:$0xff]  ;;  %s2204_s21 = smov 64   ;;  %s2205_s29 = smov 96  }
  0x85   : > { %s538_s30 = scalar_select %p537_p10, %s2320_s22, 1  ;;  %1805 = vmatpush3.bf16.msra.mxu0 %v1976_v7  ;;  %1808 = vmatprep.mubr.msk.bf16.mxu0 %vm2203_vm1, %v2202_v8  ;;  %v1735_v16 = vld [vmem:[%s2665_s2] ss:$0 sm:$0xff]  ;;  %vm644_vm2 = vcmask 64512   ;;  %vm1314_vm3 = vcmask 130048   ;;  %vm1316_vm4 = vcmask 195584  }
  0x86   : > { %1806 = vmatprep.subr.bf16.mxu0 %v2202_v8  ;;  %1819 = vmatprep.mubr.msk.f32.mxu1 %vm2203_vm1, %v2202_v8  ;;  %v1736_v20 = vld [vmem:[#allocation2] ss:$0 sm:$0xff]  ;;  %s2208_s23 = smov 80   ;;  %s2209_s15 = smov 112   ;;  %vm1531_vm5 = vcmask 523264  }
  0x87   : > { %s1733_s26 = sshll.u32 %s538_s30, 3  ;;  %s2206_s30 = smov 88  }
  0x88   : > { %s540_s16 = scalar_lea.vmem %s2663_s0, %s1733_s26  ;;  %s2207_s26 = smov 120  }
  0x89   : > { %v542_v0 = vld [vmem:[%s540_s16] sm:$0xff]  ;;  %1807 = vmatpush3.bf16.msra.mxu0 %v1977_v9  ;;  %s2210_s16 = smov 72   ;;  %s2211_s27 = smov 104  }
  0x8a   : > { %v544_v1 = vsel %vm543_vm0, %v542_v0, 0.0  ;;  %1812 = vmatprep.subr.mxu0 %v2202_v8  ;;  %s2212_s24 = smov 48   ;;  %s2213_s18 = smov 40  }
  0x8b   : > { %545 = vadd.xlane.f32.xlu0 %v544_v1  ;;  %s2214_s17 = smov 56   ;;  %s2711_s25 = sld [smem:[#allocation22_spill]] }
  0x8c   : > { %s1771_s13 = sshll.u32 %s2320_s22, 7  ;;  %p2713_p3 = scmp.ne.s32.totalorder %s2697_s28, 0 }
  0x8d   : > { %s2218_s22 = smov [#allocation10]  }
 0x118   : > { %v546_v2 = vpop.xlane.xlu0 %545 }
 0x119   : > { %v548_v3 = vmul.f32 0.03125, %v546_v2 }
 0x11b   : > { %v549_v4 = vsub.f32 %v542_v0, %v548_v3 }
 0x11d   : > { %v550_v5 = vmul.f32 %v549_v4, %v549_v4 }
 0x11f   : > { %v551_v6 = vsel %vm543_vm0, %v550_v5, 0.0 }
 0x120   : > { %552 = vadd.xlane.f32.xlu0 %v551_v6 }
 0x1ad   : > { %v553_v10 = vpop.xlane.xlu0 %552 }
 0x1ae   : > { %v554_v11 = vmul.f32 0.03125, %v553_v10 }
 0x1b0   : > { %v555_v12 = vadd.f32 1e-05, %v554_v11 }
 0x1b2   : > { %1986 = vrsqrt.f32 %v555_v12 }
 0x1bc   : > { %v1987_v13 = vpop.eup %1986 }
 0x1bd   : > { %v557_v15 = vmul.f32 %v1987_v13, %v549_v4 }
 0x1bf   : > { %v565_v17 = vmul.f32 %v1734_v14, %v557_v15 }
 0x1c1   : > { %v2495_v18 = vadd.f32 %v1735_v16, %v565_v17 }
 0x1c3   : > { %v574_v19 = vpack.c.bf16 %v2495_v18, %v2495_v18 }
 0x1c5   : > { %1809 = vmatmul.mubr.msk.bf16.vlgmr.msra.gmra.mrb[0].mxu0 %vm543_vm0, %v574_v19 }
 0x1c6   : > { %1814 = vmatprep.mubr.msk.f32.mxu0 %vm2203_vm1, %v2202_v8 }
 0x298   : > { %v635_v21 = vpop.f32.mrb[0].mxu0 }
 0x299   : > { %v2502_v22 = vadd.f32 %v1736_v20, %v635_v21  ;;  %v1810_v23 = vpop.f32.mrb[1].mxu0  ;;  %v1978_v21 = vld [vmem:[%s2668_s5] sm:$0xff]  }
 0x29a   : > { %v638_v24 = vpop.f32.mrb[2].mxu0 }
 0x29b   : > { %730 = vrot.lane.b32.xlu0 %v2502_v22, %s2204_s21  ;;  %642 = vrot.lane.b32.xlu1 %v2502_v22, %s2205_s29  ;;  %v1811_v25 = vpop.f32.mrb[3].mxu0  ;;  %s2215_s21 = smov 8   ;;  %s2216_s29 = smov 16  }
 0x29f   : > { %808 = vrot.lane.b32.xlu0 %v2502_v22, %s2206_s30  ;;  %s2217_s30 = smov 24  }
 0x2a3   : > { %806 = vrot.lane.b32.xlu0 %v2502_v22, %s2207_s26 }
 0x30d   : > { %v731_v26 = vpop.permute.xlu0 %730  ;;  %v643_v27 = vpop.permute.xlu1 %642 }
 0x30e   : > { %1813 = vmatpush3.xpose.msk.msra.mxu0 %vm644_vm2, %v643_v27  ;;  %1818 = vmatpush3.msra.mxu1 %v731_v26 }
 0x30f   : > { %1822 = vmatprep.subr.mxu1 %v2202_v8  ;;  %1827 = vmatprep.subr.mxu0 %v2202_v8 }
 0x311   : > { %1815 = vmatmul.mubr.msk.f32.vlgmr.msra.gmra.mrb[4].mxu0 %vm644_vm2, %v2502_v22  ;;  %v809_v36 = vpop.permute.xlu0 %808 }
 0x312   : > { %1829 = vmatprep.mubr.msk.f32.mxu0 %vm2203_vm1, %v2202_v8 }
 0x315   : > { %v807_v37 = vpop.permute.xlu0 %806 }
 0x3e4   : > { %v715_v28 = vpop.f32.mrb[4].mxu0 }
 0x3e5   : > { %v1816_v29 = vpop.f32.mrb[5].mxu0  ;;  %v719_v30 = vsel %vm644_vm2, %v715_v28, -inf }
 0x3e6   : > { %720 = vmax.xlane.f32.xlu1 %v719_v30 }
 0x3f7   : > { %973 = vrot.lane.b32.xlu1 %v2502_v22, %s2208_s23  ;;  %s534_s23 = sand.u32 1, %s2188_s19  }
 0x473   : > { %v721_v31 = vpop.xlane.xlu1 %720 }
 0x474   : > { %v722_v32 = vsub.f32 %v715_v28, %v721_v31 }
 0x476   : > { %v723_v33 = vmul.f32 1.442695, %v722_v32 }
 0x477   : > { %v974_v42 = vpop.permute.xlu1 %973 }
 0x478   : > { %1988 = vpow2.f32 %v723_v33 }
 0x482   : > { %v1989_v34 = vpop.eup %1988 }
 0x483   : > { %v725_v35 = vsel %vm644_vm2, %v1989_v34, 0.0 }
 0x484   : > { %726 = vadd.xlane.f32.xlu0 %v725_v35 }
 0x49a   : > { %971 = vrot.lane.b32.xlu0 %v2502_v22, %s2209_s15  ;;  %s1732_s15 = sshll.u32 %s534_s23, 3 }
 0x49b   : > { %s536_s20 = scalar_lea.vmem [#allocation10], %s1732_s15  ;;  %s2126_s15 = sshll.u32 %s2218_s22, 4  ;;  %s2127_s15 = int_to_ptr.vmem [resolvable:$false] %s2126_s15 }
 0x49c   : > { %s1620_s14 = sshll.u32 %s536_s20, 4  ;;  %s2622_s14 = int_to_ptr.vmem [resolvable:$true] %s1620_s14 }
 0x49d   : > { %p2129_p8 = scmp.lt.s32.totalorder %s2622_s14, %s2127_s15 }
 0x49e   : > { %1138 = vrot.lane.b32.xlu0 %v2502_v22, %s2210_s16  ;;  %s1607_s16 = scalar_lea.sflag [#allocation4], %s534_s23 }
 0x4a2   : > { %1136 = vrot.lane.b32.xlu0 %v2502_v22, %s2211_s27  ;;  %s2122_s27 = scalar_lea.vmem %s2622_s14, 128 }
 0x4a3   : > { %p2123_p2 = scmp.ne.s32.totalorder %s2622_s14, %s2122_s27 }
 0x4a5   : > { %p2124_p4 = pnand %p2123_p2, %p2713_p3 }
 0x4a7   : > { %p2125_p7 = pneg %p2124_p4 }
 0x511   : > { %v727_v38 = vpop.xlane.xlu0 %726 }
 0x512   : > { %1990 = vrcp.f32 %v727_v38 }
 0x515   : > { %v972_v41 = vpop.permute.xlu0 %971 }
 0x519   : > { %v1139_v43 = vpop.permute.xlu0 %1138 }
 0x51c   : > { %v1991_v39 = vpop.eup %1990 }
 0x51d   : > { %v729_v40 = vmul.f32 %v1991_v39, %v1989_v34  ;;  %v1137_v44 = vpop.permute.xlu0 %1136 }
 0x51f   : > { %1820 = vmatmul.mubr.msk.f32.vlgmr.msra.gmra.mrb[0].mxu1 %vm644_vm2, %v729_v40 }
 0x520   : > { %1823 = vmatpush3.xpose.msk.msra.mxu1 %vm644_vm2, %v809_v36  ;;  %1824 = vmatprep.mubr.msk.f32.mxu1 %vm2203_vm1, %v2202_v8  ;;  %v1752_v36 = vld [vmem:[#allocation5] ss:$0 sm:$0xff] }
 0x521   : > { %1832 = vmatprep.subr.mxu1 %v2202_v8 }
 0x523   : > { %1825 = vmatmul.mubr.msk.f32.vlgmr.msra.gmra.mrb[2].mxu1 %vm644_vm2, %v807_v37 }
 0x524   : > { %1833 = vmatpush3.xpose.msk.msra.mxu1 %vm644_vm2, %v974_v42  ;;  %1834 = vmatprep.mubr.msk.f32.mxu1 %vm2203_vm1, %v2202_v8 }
 0x525   : > { %1842 = vmatprep.subr.mxu1 %v2202_v8 }
 0x527   : > { %1835 = vmatmul.mubr.msk.f32.vlgmr.msra.gmra.mrb[4].mxu1 %vm644_vm2, %v972_v41 }
 0x528   : > { %1843 = vmatpush3.xpose.msk.msra.mxu1 %vm644_vm2, %v1139_v43  ;;  %1844 = vmatprep.mubr.msk.f32.mxu1 %vm2203_vm1, %v2202_v8 }
 0x529   : > { %1852 = vmatprep.subr.bf16.mxu1 %v2202_v8 }
 0x52b   : > { %1845 = vmatmul.mubr.msk.f32.vlgmr.msra.gmra.mrb[6].mxu1 %vm644_vm2, %v1137_v44 }
 0x52c   : > { %1856 = vmatprep.mubr.msk.bf16.mxu1 %vm2203_vm1, %v2202_v8  ;;  %1853 = vmatpush3.bf16.msra.mxu1 %v1978_v21 }
 0x52d   : > { %1854 = vmatprep.subr.bf16.mxu1 %v2202_v8 }
 0x5f2   : > { %v2539_v45 = vpop.f32.mrb[0].mxu1 }
 0x5f3   : > { %v1821_v46 = vpop.f32.mrb[1].mxu1 }
 0x5f6   : > { %v880_v47 = vpop.f32.mrb[2].mxu1 }
 0x5f7   : > { %v1826_v48 = vpop.f32.mrb[3].mxu1  ;;  %v884_v49 = vsel %vm644_vm2, %v880_v47, -inf }
 0x5f8   : > { %885 = vmax.xlane.f32.xlu0 %v884_v49  ;;  %v1980_v49 = vld [vmem:[%s2672_s9] sm:$0xff]  }
 0x5fa   : > { %v1045_v50 = vpop.f32.mrb[4].mxu1 }
 0x5fb   : > { %v1836_v51 = vpop.f32.mrb[5].mxu1  ;;  %v1049_v52 = vsel %vm644_vm2, %v1045_v50, -inf }
 0x5fc   : > { %1050 = vmax.xlane.f32.xlu1 %v1049_v52 }
 0x5fe   : > { %v1210_v53 = vpop.f32.mrb[6].mxu1 }
 0x5ff   : > { %v1846_v54 = vpop.f32.mrb[7].mxu1  ;;  %v1214_v55 = vsel %vm644_vm2, %v1210_v53, -inf }
 0x600   : > { %1215 = vmax.xlane.f32.xlu0 %v1214_v55  ;;  %v1756_v54 = vld [vmem:[#allocation7] ss:$0 sm:$0xff] }
 0x60d   : > { %1060 = vrot.lane.b32.xlu1 %v2502_v22, %s2212_s24  ;;  %s2710_s24 = sld [smem:[#allocation21_spill]] }
 0x685   : > { %v886_v56 = vpop.xlane.xlu0 %885 }
 0x686   : > { %v887_v57 = vsub.f32 %v880_v47, %v886_v56  ;;  %v1757_v56 = vld [vmem:[#allocation8] ss:$0 sm:$0xff] }
 0x688   : > { %v888_v58 = vmul.f32 1.442695, %v887_v57 }
 0x689   : > { %v1051_v59 = vpop.xlane.xlu1 %1050 }
 0x68a   : > { %1992 = vpow2.f32 %v888_v58  ;;  %v1052_v60 = vsub.f32 %v1045_v50, %v1051_v59  ;;  %v1981_v50 = vld [vmem:[%s2672_s9 + $0x8] sm:$0xff]  }
 0x68c   : > { %v1053_v61 = vmul.f32 1.442695, %v1052_v60  ;;  %v1982_v60 = vld [vmem:[%s2674_s11] sm:$0xff]  }
 0x68d   : > { %v1216_v62 = vpop.xlane.xlu0 %1215  ;;  %v1061_v9 = vpop.permute.xlu1 %1060 }
 0x68e   : > { %1994 = vpow2.f32 %v1053_v61  ;;  %v1217_v63 = vsub.f32 %v1210_v53, %v1216_v62  ;;  %v1983_v61 = vld [vmem:[%s2674_s11 + $0x8] sm:$0xff]   ;;  %v1984_v62 = vld [vmem:[%s2674_s11 + $0x10] sm:$0xff]  }
 0x690   : > { %v1218_v0 = vmul.f32 1.442695, %v1217_v63  ;;  %v1985_v63 = vld [vmem:[%s2674_s11 + $0x18] sm:$0xff]  }
 0x692   : > { %1996 = vpow2.f32 %v1218_v0  ;;  %v1758_v0 = vld [vmem:[%s2673_s10] ss:$0 sm:$0xff] }
 0x694   : > { %v1993_v1 = vpop.eup %1992 }
 0x695   : > { %v890_v2 = vsel %vm644_vm2, %v1993_v1, 0.0 }
 0x696   : > { %891 = vadd.xlane.f32.xlu0 %v890_v2 }
 0x698   : > { %v1995_v3 = vpop.eup %1994 }
 0x699   : > { %v1055_v4 = vsel %vm644_vm2, %v1995_v3, 0.0 }
 0x69a   : > { %1056 = vadd.xlane.f32.xlu0 %v1055_v4 }
 0x69c   : > { %v1997_v5 = vpop.eup %1996 }
 0x69d   : > { %v1220_v6 = vsel %vm644_vm2, %v1997_v5, 0.0 }
 0x69e   : > { %1221 = vadd.xlane.f32.xlu1 %v1220_v6 }
 0x6af   : > { %1225 = vrot.lane.b32.xlu1 %v2502_v22, %s2213_s18 }
 0x6b0   : > { %895 = vrot.lane.b32.xlu0 %v2502_v22, %s2214_s17  ;;  %v1979_v22 = vld [vmem:[%s2668_s5 + $0x8] sm:$0xff]  }
 0x6b1   : > { %1855 = vmatpush3.bf16.msra.mxu1 %v1979_v22 }
 0x6b2   : > { %1868 = vmatprep.subr.bf16.mxu1 %v2202_v8 }
 0x723   : > { %v892_v7 = vpop.xlane.xlu0 %891 }
 0x724   : > { %1998 = vrcp.f32 %v892_v7 }
 0x727   : > { %v1057_v10 = vpop.xlane.xlu0 %1056 }
 0x728   : > { %2000 = vrcp.f32 %v1057_v10 }
 0x72b   : > { %v1222_v11 = vpop.xlane.xlu1 %1221  ;;  %v896_v12 = vpop.permute.xlu0 %895 }
 0x72c   : > { %2002 = vrcp.f32 %v1222_v11  ;;  %1828 = vmatpush3.msra.mxu0 %v896_v12 }
 0x72d   : > { %1837 = vmatprep.subr.mxu0 %v2202_v8 }
 0x72e   : > { %v1999_v13 = vpop.eup %1998 }
 0x72f   : > { %v894_v14 = vmul.f32 %v1999_v13, %v1993_v1  ;;  %v1226_v17 = vpop.permute.xlu1 %1225 }
 0x731   : > { %1830 = vmatmul.mubr.msk.f32.vlgmr.msra.gmra.mrb[6].mxu0 %vm644_vm2, %v894_v14 }
 0x732   : > { %v2001_v15 = vpop.eup %2000  ;;  %1838 = vmatpush3.msra.mxu0 %v1061_v9  ;;  %1839 = vmatprep.mubr.msk.f32.mxu0 %vm2203_vm1, %v2202_v8 }
 0x733   : > { %v1059_v16 = vmul.f32 %v2001_v15, %v1995_v3  ;;  %1847 = vmatprep.subr.mxu0 %v2202_v8 }
 0x735   : > { %1840 = vmatmul.mubr.msk.f32.vlgmr.msra.gmra.mrb[8].mxu0 %vm644_vm2, %v1059_v16  ;;  %v1762_v16 = vld [vmem:[%s2675_s12] ss:$0 sm:$0xff] }
 0x736   : > { %v2003_v19 = vpop.eup %2002  ;;  %1848 = vmatpush3.msra.mxu0 %v1226_v17  ;;  %1849 = vmatprep.mubr.msk.f32.mxu0 %vm2203_vm1, %v2202_v8 }
 0x737   : > { %v1224_v20 = vmul.f32 %v2003_v19, %v1997_v5  ;;  %1860 = vmatprep.subr.bf16.mxu0 %v2202_v8 }
 0x739   : > { %1850 = vmatmul.mubr.msk.f32.vlgmr.msra.gmra.mrb[10].mxu0 %vm644_vm2, %v1224_v20 }
 0x73a   : > { %1864 = vmatprep.mubr.msk.bf16.mxu0 %vm2203_vm1, %v2202_v8  ;;  %1861 = vmatpush3.bf16.msra.mxu0 %v1980_v49 }
 0x73b   : > { %1862 = vmatprep.subr.bf16.mxu0 %v2202_v8 }
 0x73e   : > { %1863 = vmatpush3.bf16.msra.mxu0 %v1981_v50 }
 0x804   : > { %v967_v23 = vpop.f32.mrb[6].mxu0 }
 0x805   : > { %1302 = vrot.lane.b32.xlu1 %v967_v23, %s2215_s21  ;;  %v1831_v24 = vpop.f32.mrb[7].mxu0 }
 0x808   : > { %v1132_v25 = vpop.f32.mrb[8].mxu0 }
 0x809   : > { %1306 = vrot.lane.b32.xlu0 %v1132_v25, %s2216_s29  ;;  %v1841_v26 = vpop.f32.mrb[9].mxu0 }
 0x80c   : > { %v1297_v27 = vpop.f32.mrb[10].mxu0 }
 0x80d   : > { %1310 = vrot.lane.b32.xlu1 %v1297_v27, %s2217_s30  ;;  %v1851_v28 = vpop.f32.mrb[11].mxu0  ;;  %s2712_s30 = sld [smem:[#allocation23_spill]] }
 0x813   : > { %s2620_s26 = scalar_lea.hbm %s2712_s30, %s1771_s13 }
 0x877   : > { %v1303_v29 = vpop.permute.xlu1 %1302 }
 0x878   : > { %v1313_v31 = vsel %vm644_vm2, %v2539_v45, %v1303_v29 }
 0x87b   : > { %v1307_v30 = vpop.permute.xlu0 %1306 }
 0x87c   : > { %v1315_v32 = vsel %vm1314_vm3, %v1313_v31, %v1307_v30 }
 0x87f   : > { %v1311_v33 = vpop.permute.xlu1 %1310 }
 0x880   : > { %v1317_v34 = vsel %vm1316_vm4, %v1315_v32, %v1311_v33 }
 0x881   : > { %v1318_v35 = vpack.c.bf16 %v1317_v34, %v1317_v34  ;;  %v1768_v34 = vld [vmem:[%s2710_s24] ss:$0 sm:$0xff]  ;;  %s2128_s24 = scalar_lea.vmem %s2127_s15, 256 }
 0x882   : > { %p2130_p11 = scmp.lt.s32.totalorder %s2128_s24, %s2122_s27 }
 0x883   : > { %1857 = vmatmul.mubr.msk.bf16.vlgmr.msra.gmra.mrb[8].mxu1 %vm543_vm0, %v1318_v35 }
 0x884   : > { %1876 = vmatprep.mubr.msk.bf16.mxu1 %vm2203_vm1, %v2202_v8  ;;  %1869 = vmatpush3.bf16.msra.mxu1 %v1982_v60  ;;  %p2131_p13 = por %p2130_p11, %p2129_p8 }
 0x885   : > { %1870 = vmatprep.subr.bf16.mxu1 %v2202_v8 }
 0x886   : > { %p2132_p1 = pnand %p2131_p13, %p2125_p7 }
 0x888   : > { %1871 = vmatpush3.bf16.msra.mxu1 %v1983_v61 }
 0x889   : > { %1872 = vmatprep.subr.bf16.mxu1 %v2202_v8 }
 0x88c   : > { %1873 = vmatpush3.bf16.msra.mxu1 %v1984_v62 }
 0x88d   : > { %1874 = vmatprep.subr.bf16.mxu1 %v2202_v8 }
 0x890   : > { %1875 = vmatpush3.bf16.msra.mxu1 %v1985_v63 }
 0x956   : > { %v1379_v37 = vpop.f32.mrb[8].mxu1 }
 0x957   : > { %v1380_v38 = vadd.f32 %v1752_v36, %v1379_v37  ;;  %v1858_v39 = vpop.f32.mrb[9].mxu1  ;;  %v1769_v36 = vld [vmem:[%s2711_s25] ss:$0 sm:$0xff] }
 0x958   : > { %v1382_v40 = vpop.f32.mrb[10].mxu1 }
 0x959   : > { %v1859_v41 = vpop.f32.mrb[11].mxu1  ;;  %v1385_v42 = vadd.f32 %v1380_v38, %v2495_v18 }
 0x95b   : > { %v1386_v43 = vsel %vm543_vm0, %v1385_v42, 0.0 }
 0x95c   : > { %1387 = vadd.xlane.f32.xlu0 %v1386_v43 }
 0x9e9   : > { %v1388_v44 = vpop.xlane.xlu0 %1387 }
 0x9ea   : > { %v1389_v45 = vmul.f32 0.03125, %v1388_v44 }
 0x9ec   : > { %v1390_v46 = vsub.f32 %v1385_v42, %v1389_v45 }
 0x9ee   : > { %v1391_v47 = vmul.f32 %v1390_v46, %v1390_v46 }
 0x9f0   : > { %v1392_v48 = vsel %vm543_vm0, %v1391_v47, 0.0 }
 0x9f1   : > { %1393 = vadd.xlane.f32.xlu1 %v1392_v48 }
 0xa7e   : > { %v1394_v18 = vpop.xlane.xlu1 %1393 }
 0xa7f   : > { %v1395_v51 = vmul.f32 0.03125, %v1394_v18 }
 0xa81   : > { %v1396_v52 = vadd.f32 1e-05, %v1395_v51 }
 0xa83   : > { %2004 = vrsqrt.f32 %v1396_v52 }
 0xa8d   : > { %v2005_v53 = vpop.eup %2004 }
 0xa8e   : > { %v1398_v55 = vmul.f32 %v2005_v53, %v1390_v46 }
 0xa90   : > { %v1406_v57 = vmul.f32 %v1756_v54, %v1398_v55 }
 0xa92   : > { %v1414_v58 = vadd.f32 %v1757_v56, %v1406_v57 }
 0xa94   : > { %v1415_v59 = vpack.c.bf16 %v1414_v58, %v1414_v58 }
 0xa96   : > { %1865 = vmatmul.mubr.msk.bf16.vlgmr.msra.gmra.mrb[12].mxu0 %vm543_vm0, %v1415_v59 }
 0xb69   : > { %v1476_v1 = vpop.f32.mrb[12].mxu0 }
 0xb6a   : > { %v1477_v2 = vadd.f32 %v1758_v0, %v1476_v1  ;;  %v1866_v3 = vpop.f32.mrb[13].mxu0 }
 0xb6b   : > { %v1479_v4 = vpop.f32.mrb[14].mxu0 }
 0xb6c   : > { %v1483_v5 = vmul.f32 0.044715, %v1477_v2  ;;  %v1867_v6 = vpop.f32.mrb[15].mxu0  ;;  %v1482_v13 = vmul.f32 0.5, %v1477_v2 }
 0xb6e   : > { %v1484_v7 = vmul.f32 %v1483_v5, %v1477_v2 }
 0xb70   : > { %v1485_v9 = vmul.f32 %v1484_v7, %v1477_v2 }
 0xb72   : > { %v1486_v10 = vadd.f32 %v1485_v9, %v1477_v2 }
 0xb74   : > { %v1487_v11 = vmul.f32 0.7978846, %v1486_v10 }
 0xb76   : > { %2006 = vtanh.f32 %v1487_v11 }
 0xb80   : > { %v2007_v12 = vpop.eup %2006 }
 0xb81   : > { %v1489_v14 = vadd.f32 1.0, %v2007_v12 }
 0xb83   : > { %v1490_v8 = vmul.f32 %v1489_v14, %v1482_v13 }
 0xb85   : > { %v1491_v15 = vpack.c.bf16 %v1490_v8, %v1490_v8 }
 0xb87   : > { %1877 = vmatmul.mubr.msk.bf16.vlgmr.msra.gmra.mrb[12].mxu1 %vm1531_vm5, %v1491_v15 }
 0xc5a   : > { %v1569_v17 = vpop.f32.mrb[12].mxu1 }
 0xc5b   : > { %v1570_v19 = vadd.f32 %v1762_v16, %v1569_v17  ;;  %v1878_v20 = vpop.f32.mrb[13].mxu1 }
 0xc5c   : > { %v1572_v21 = vpop.f32.mrb[14].mxu1 }
 0xc5d   : > { %v1879_v22 = vpop.f32.mrb[15].mxu1  ;;  %v1575_v23 = vadd.f32 %v1570_v19, %v1414_v58 }
 0xc5f   : > { %v1576_v24 = vsel %vm543_vm0, %v1575_v23, 0.0 }
 0xc60   : > { %1577 = vadd.xlane.f32.xlu0 %v1576_v24 }
 0xced   : > { %v1578_v25 = vpop.xlane.xlu0 %1577 }
 0xcee   : > { %v1579_v26 = vmul.f32 0.03125, %v1578_v25 }
 0xcf0   : > { %v1580_v27 = vsub.f32 %v1575_v23, %v1579_v26 }
 0xcf2   : > { %v1581_v28 = vmul.f32 %v1580_v27, %v1580_v27 }
 0xcf4   : > { %v1582_v29 = vsel %vm543_vm0, %v1581_v28, 0.0 }
 0xcf5   : > { %1583 = vadd.xlane.f32.xlu0 %v1582_v29 }
 0xd82   : > { %v1584_v30 = vpop.xlane.xlu0 %1583 }
 0xd83   : > { %v1585_v31 = vmul.f32 0.03125, %v1584_v30 }
 0xd85   : > { %v1586_v32 = vadd.f32 1e-05, %v1585_v31 }
 0xd87   : > { %2008 = vrsqrt.f32 %v1586_v32 }
 0xd91   : > { %v2009_v33 = vpop.eup %2008 }
 0xd92   : > { %v1588_v35 = vmul.f32 %v2009_v33, %v1580_v27 }
 0xd94   : > { %v1596_v37 = vmul.f32 %v1768_v34, %v1588_v35 }
 0xd96   : > { %v1604_v38 = vadd.f32 %v1769_v36, %v1596_v37 }
 0xd98   : > { %1605 = vst.msk [vmem:[%s536_s20] sm:$0xff] %vm543_vm0, %v1604_v38 }
 0xd99   : > { %2135 = shalt.err (!%p2132_p1)
}
 0xd9a   : > { %s2136_s23 = scalar_lea.hbm %s2620_s26, 128  ;;  %s2140_s25 = scalar_lea.hbm %s2712_s30, 256 }
 0xd9b   : > { %p2137_p0 = scmp.ne.s32.totalorder %s2620_s26, %s2136_s23  ;;  %p2141_p9 = scmp.lt.u32.totalorder %s2620_s26, %s2712_s30 }
 0xd9c   : > { %p2142_p12 = scmp.lt.u32.totalorder %s2140_s25, %s2136_s23  ;;  %p2144_p2 = scmp.lt.u32.totalorder %s2136_s23, %s2620_s26 }
 0xd9d   : > { %p2138_p6 = pnand %p2137_p0, %p2713_p3 }
 0xd9e   : > { %p2143_p10 = por %p2142_p12, %p2141_p9 }
 0xd9f   : > { %p2139_p5 = pneg %p2138_p6 }
 0xda0   : > { %p2145_p4 = por %p2144_p2, %p2143_p10 }
 0xda2   : > { %p2146_p7 = pnand %p2145_p4, %p2139_p5 }
 0xda4   : > { %2149 = shalt.err (!%p2146_p7)
}
 0xda5   : > { %1896 = dma.vmem_to_hbm [thread:$0]  (%p2713_p3), %s2622_s14, 128, %s2620_s26, %s1607_s16  }
 0xda6 PF: > { %s2714_s21 = sld [smem:[#allocation17_spill]]  ;;  %s2715_s29 = sld [smem:[#allocation15_spill]] }
 0xda7   : > { %s2716_s27 = sld [smem:[#allocation20_spill]] }
 0xdac   : > { %p1923_p8 = scmp.ge.s32.totalorder %s2714_s21, 2  ;;  %s1632_s22 = sand.u32 1, %s2715_s29  }
 0xdad   : > { %p2717_p11 = scmp.ne.s32.totalorder %s2716_s27, 0  ;;  %s1633_s15 = scalar_lea.sflag [#allocation4], %s1632_s22 }
 0xdaf   : > { %p1912_p13 = pnand %p1923_p8, %p2717_p11 }
 0xdb1   : > { %2179 = dma.done.wait (!%p1912_p13), %s1633_s15, 128  }
 0xdb2   : > { %2181 = vsyncadd (!%p1912_p13), %s1633_s15, 4294967168  ;;  %s2718_s21 = sld [smem:[#allocation18_spill]]  ;;  %s2719_s24 = sld [smem:[#allocation16_spill]] }
 0xdb3   : > { %s2720_s20 = sld [smem:[#allocation19_spill]]  ;;  %s2721_s18 = smov %s2188_s19 }
 0xdb8   : > { %p28_p1 = scmp.ge.s32.totalorder %s2718_s21, 4   ;;  %s2722_s19 = smov %s2719_s24 }
 0xdba   :  { %30 = sbr.rel (!%p28_p1) target bundleno = 10 (0xa), region = 132 }
 0xdc1   :  { %1638 = vsyncpa [#allocation3], 1 }
 0xdc2   :  { %1640 = vsyncpa [#allocation3 + $0x1], 1 }
 0xdc3   :  { %1641 = vsyncpa [#allocation6], 1 }
 0xdc4   :  { %1642 = vsyncpa [#allocation9], 1 }
 0xdc5   :  { %1643 = vsyncpa [#allocation4], 1 }
 0xdc6   :  { %1645 = vsyncpa [#allocation4 + $0x1], 1 }

</bundles_post_ra>
